<compile_context>
chip_gen: v7x
topology: tpu7x:2x2x1
jax: 0.10.0
libtpu: 0.0.40
codegen_flags: <defaults>
</compile_context>

<pallas_src>
import functools
import math

import jax
import jax.numpy as jnp
from jax.experimental import pallas as pl
from jax.experimental.pallas import tpu as pltpu


# ------------------------------------------------------------------ helpers

def _layernorm(x, gamma, beta, eps):
    mu = jnp.mean(x, axis=-1, keepdims=True)
    var = jnp.mean((x - mu) ** 2, axis=-1, keepdims=True)
    return (x - mu) * jax.lax.rsqrt(var + eps) * gamma + beta


def _gelu_tanh(x):
    # TODO(synk): HF BERT default hidden_act="gelu" is exact erf-GELU; using the
    # tanh approximation since erf has no guaranteed Mosaic lowering.
    c = math.sqrt(2.0 / math.pi)
    return 0.5 * x * (1.0 + jnp.tanh(c * (x + 0.044715 * x * x * x)))


# ------------------------------------------------------------------ kernels

def embed_kernel(x_ref, pe_ref, w1_ref, w2_ref, vec_ref, h0_ref, *, eps):
    """h0 = LayerNorm(tanh(x @ w1 + b1) @ w2 + b2 + pos_emb + time_emb)."""
    b1 = vec_ref[0:1, :]
    b2 = vec_ref[1:2, :]
    g = vec_ref[2:3, :]
    be = vec_ref[3:4, :]

    x = x_ref[...].astype(jnp.bfloat16)
    t = jnp.tanh(jnp.dot(x, w1_ref[...],
                         preferred_element_type=jnp.float32) + b1)
    h0 = jnp.dot(t.astype(jnp.bfloat16), w2_ref[...],
                 preferred_element_type=jnp.float32) + b2
    h0 = h0 + pe_ref[...]
    h0_ref[...] = _layernorm(h0, g, be, eps)


def layers_kernel(h0_ref, wqkv_ref, wo_ref, wi_ref, wo2_ref, vec_ref, out_ref,
                  *, num_heads, seq, eps):
    """Grid axis = BERT layers.  out_ref (constant index map) holds the hidden
    state resident in VMEM across all layers."""
    layer = pl.program_id(0)

    # Seed the resident hidden state once.
    @pl.when(layer == 0)
    def _():
        out_ref[...] = h0_ref[...]

    h = out_ref[...]                                   # [B*S, H] f32 residual
    n_tok, H = h.shape
    B = n_tok // seq
    hd = H // num_heads
    ffn_dim = wi_ref.shape[-1]
    scale = 1.0 / math.sqrt(hd)

    # Packed per-layer vectors: [8, W] f32.
    vec = vec_ref[0]
    bqkv = vec[0:1, :3 * H]
    bo = vec[1:2, :H]
    g1 = vec[2:3, :H]
    be1 = vec[3:4, :H]
    bi = vec[4:5, :ffn_dim]
    bo2 = vec[5:6, :H]
    g2 = vec[6:7, :H]
    be2 = vec[7:8, :H]

    # ---- fused QKV projection (bf16 MXU, f32 accumulate) --------------------
    h_bf = h.astype(jnp.bfloat16)
    qkv = jnp.dot(h_bf, wqkv_ref[0],
                  preferred_element_type=jnp.float32) + bqkv       # [B*S, 3H]
    q = qkv[:, 0 * H:1 * H]
    k = qkv[:, 1 * H:2 * H]
    v = qkv[:, 2 * H:3 * H]

    # ---- true per-(batch, head) attention -----------------------------------
    # For each head: 3-D batched matmuls over the batch dim (no FLOP blowup,
    # softmax stats in f32, probs cast to bf16 for the P.V matmul).
    ctx_heads = []
    for hh in range(num_heads):
        sl = slice(hh * hd, (hh + 1) * hd)
        qh = q[:, sl].reshape(B, seq, hd).astype(jnp.bfloat16)
        kh = k[:, sl].reshape(B, seq, hd).astype(jnp.bfloat16)
        vh = v[:, sl].reshape(B, seq, hd).astype(jnp.bfloat16)
        s = jnp.einsum('bqd,bkd->bqk', qh, kh,
                       preferred_element_type=jnp.float32) * scale  # [B, S, S]
        s = s - jnp.max(s, axis=-1, keepdims=True)
        p = jnp.exp(s)
        p = p * pl.reciprocal(jnp.sum(p, axis=-1, keepdims=True), approx=True)
        ctxh = jnp.einsum('bqk,bkd->bqd', p.astype(jnp.bfloat16), vh,
                          preferred_element_type=jnp.float32)       # [B, S, hd]
        ctx_heads.append(ctxh.reshape(n_tok, hd))
    ctx = jnp.concatenate(ctx_heads, axis=-1)                       # [B*S, H]

    attn = jnp.dot(ctx.astype(jnp.bfloat16), wo_ref[0],
                   preferred_element_type=jnp.float32) + bo
    h1 = _layernorm(attn + h, g1, be1, eps)

    # ---- FFN -----------------------------------------------------------------
    inter = _gelu_tanh(jnp.dot(h1.astype(jnp.bfloat16), wi_ref[0],
                               preferred_element_type=jnp.float32) + bi)
    ffn = jnp.dot(inter.astype(jnp.bfloat16), wo2_ref[0],
                  preferred_element_type=jnp.float32) + bo2
    out_ref[...] = _layernorm(ffn + h1, g2, be2, eps)


# ------------------------------------------------------------------ wrapper

def pretrained_timed_transformer_forward(params, cfg, x, timesteps):
    """x: [B, S, in_channels] float, timesteps: [B] int -> [B, S, H] float."""
    B, S, C = x.shape
    H = cfg["hidden_size"]
    I = cfg["intermediate_size"]
    L = cfg["num_hidden_layers"]
    eps = cfg["layer_norm_eps"]
    nH = cfg["num_attention_heads"]

    # Plain-JAX glue: embedding-table gathers + broadcast, wrapper-side flatten.
    time_emb = jnp.take(params["time_emb"], timesteps, axis=0)       # [B, H]
    pos_emb = params["pos_emb"][:S]                                  # [S, H]
    pe = (pos_emb[None, :, :] + time_emb[:, None, :]).reshape(B * S, H)
    pe = pe.astype(jnp.float32)
    x_flat = x.reshape(B * S, C).astype(jnp.float32)

    # ---- embedding stage (one-shot, keeps its inputs out of the layer loop) --
    h0 = pl.pallas_call(
        functools.partial(embed_kernel, eps=eps),
        out_shape=jax.ShapeDtypeStruct((B * S, H), jnp.float32),
    )(x_flat, pe, params["up_w1"], params["up_w2"], params["embed_vecs"])

    # ---- transformer layers ---------------------------------------------------
    W = params["layer_vecs"].shape[-1]
    per_layer_w = (params["wqkv"].nbytes + params["wo"].nbytes +
                   params["wi"].nbytes + params["wo2"].nbytes) // L
    est = 4 * per_layer_w + 8 * B * S * H * 4 + (1 << 22)     # weights (2-buf) + activations + slack
    vmem_limit = int(min(100 * (1 << 20), max(32 * (1 << 20), est)))

    out = pl.pallas_call(
        functools.partial(layers_kernel, num_heads=nH, seq=S, eps=eps),
        out_shape=jax.ShapeDtypeStruct((B * S, H), jnp.float32),
        grid=(L,),
        in_specs=[
            pl.BlockSpec((B * S, H), lambda l: (0, 0)),         # h0 (read @ layer 0)
            pl.BlockSpec((1, H, 3 * H), lambda l: (l, 0, 0)),   # wqkv
            pl.BlockSpec((1, H, H), lambda l: (l, 0, 0)),       # wo
            pl.BlockSpec((1, H, I), lambda l: (l, 0, 0)),       # wi
            pl.BlockSpec((1, I, H), lambda l: (l, 0, 0)),       # wo2
            pl.BlockSpec((1, 8, W), lambda l: (l, 0, 0)),       # packed vectors
        ],
        out_specs=pl.BlockSpec((B * S, H), lambda l: (0, 0)),
        compiler_params=pltpu.CompilerParams(
            dimension_semantics=("arbitrary",),                 # layer axis is sequential
            vmem_limit_bytes=vmem_limit),
    )(h0, params["wqkv"], params["wo"], params["wi"], params["wo2"],
      params["layer_vecs"])
    return out.reshape(B, S, H)


# ------------------------------------------------------------------ params

def _init_params(cfg, in_channels, key):
    H, I, L = cfg["hidden_size"], cfg["intermediate_size"], cfg["num_hidden_layers"]
    W = max(3 * H, I)
    keys = iter(jax.random.split(key, 16))

    def nrm(shape, dtype=jnp.bfloat16):
        return (jax.random.normal(next(keys), shape, jnp.float32) * 0.02).astype(dtype)

    # Embedding-stage small vectors packed: rows = [up_b1, up_b2, ln_g, ln_b].
    embed_vecs = jnp.zeros((4, H), jnp.float32)
    embed_vecs = embed_vecs.at[0].set(nrm((H,), jnp.float32))
    embed_vecs = embed_vecs.at[1].set(nrm((H,), jnp.float32))
    embed_vecs = embed_vecs.at[2].set(jnp.ones((H,), jnp.float32))

    # Per-layer small vectors packed into [L, 8, W]:
    # rows = [bqkv(3H), bo(H), g1(H), be1(H), bi(I), bo2(H), g2(H), be2(H)].
    layer_vecs = jnp.zeros((L, 8, W), jnp.float32)
    layer_vecs = layer_vecs.at[:, 0, :3 * H].set(nrm((L, 3 * H), jnp.float32))
    layer_vecs = layer_vecs.at[:, 1, :H].set(nrm((L, H), jnp.float32))
    layer_vecs = layer_vecs.at[:, 2, :H].set(1.0)
    layer_vecs = layer_vecs.at[:, 4, :I].set(nrm((L, I), jnp.float32))
    layer_vecs = layer_vecs.at[:, 5, :H].set(nrm((L, H), jnp.float32))
    layer_vecs = layer_vecs.at[:, 6, :H].set(1.0)

    return {
        "time_emb": nrm((cfg["train_diff_steps"] + 1, H), jnp.float32),
        "pos_emb": nrm((cfg["max_position_embeddings"], H), jnp.float32),
        # matmul weights stored bf16 (MXU-native, half DMA / VMEM)
        "up_w1": nrm((in_channels, H)),
        "up_w2": nrm((H, H)),
        "embed_vecs": embed_vecs,
        "wqkv": nrm((L, H, 3 * H)),
        "wo": nrm((L, H, H)),
        "wi": nrm((L, H, I)),
        "wo2": nrm((L, I, H)),
        "layer_vecs": layer_vecs,
    }


# ------------------------------------------------------------------ main

if __name__ == "__main__":
    cfg = dict(
        vocab_size=50,
        hidden_size=32,
        num_hidden_layers=2,
        num_attention_heads=4,
        intermediate_size=64,
        max_position_embeddings=16,
        layer_norm_eps=1e-12,
        train_diff_steps=2000,
    )
    in_channels = 16
    B, S = 2, 8

    key = jax.random.PRNGKey(0)
    kp, kx, kt = jax.random.split(key, 3)
    params = _init_params(cfg, in_channels, kp)

    x = jax.random.normal(kx, (B, S, in_channels), jnp.float32)
    timesteps = jax.random.randint(kt, (B,), 0, cfg["train_diff_steps"] + 1)

    fwd = jax.jit(lambda p, xx, tt: pretrained_timed_transformer_forward(p, cfg, xx, tt))
    out = fwd(params, x, timesteps)
    out = jax.block_until_ready(out)

    assert out.shape == (B, S, cfg["hidden_size"])
    assert bool(jnp.all(jnp.isfinite(out)))
    print("KERNEL_OK")
</pallas_src>

<mosaic_0001>
module attributes {stable_mosaic.version = 11 : i64} {
  func.func @embed_kernel(%arg0: memref<16x16xf32, #tpu.memory_space<vmem>>, %arg1: memref<16x32xf32, #tpu.memory_space<vmem>>, %arg2: memref<16x32xbf16, #tpu.memory_space<vmem>>, %arg3: memref<32x32xbf16, #tpu.memory_space<vmem>>, %arg4: memref<4x32xf32, #tpu.memory_space<vmem>>, %arg5: memref<16x32xf32, #tpu.memory_space<vmem>>) attributes {dimension_semantics = [], scalar_prefetch = 0 : i64, scratch_operands = 0 : i64, tpu.core_type = #tpu.core_type<tc>} {
    %c0 = arith.constant 0 : index
    %c0_0 = arith.constant 0 : index
    %0 = vector.load %arg4[%c0, %c0_0] : memref<4x32xf32, #tpu.memory_space<vmem>>, vector<1x32xf32>
    %c1 = arith.constant 1 : index
    %c0_1 = arith.constant 0 : index
    %1 = vector.load %arg4[%c1, %c0_1] : memref<4x32xf32, #tpu.memory_space<vmem>>, vector<1x32xf32>
    %c2 = arith.constant 2 : index
    %c0_2 = arith.constant 0 : index
    %2 = vector.load %arg4[%c2, %c0_2] : memref<4x32xf32, #tpu.memory_space<vmem>>, vector<1x32xf32>
    %c3 = arith.constant 3 : index
    %c0_3 = arith.constant 0 : index
    %3 = vector.load %arg4[%c3, %c0_3] : memref<4x32xf32, #tpu.memory_space<vmem>>, vector<1x32xf32>
    %c0_4 = arith.constant 0 : index
    %c0_5 = arith.constant 0 : index
    %4 = vector.load %arg0[%c0_4, %c0_5] : memref<16x16xf32, #tpu.memory_space<vmem>>, vector<16x16xf32>
    %5 = arith.truncf %4 : vector<16x16xf32> to vector<16x16xbf16>
    %c0_6 = arith.constant 0 : index
    %c0_7 = arith.constant 0 : index
    %6 = vector.load %arg2[%c0_6, %c0_7] : memref<16x32xbf16, #tpu.memory_space<vmem>>, vector<16x32xbf16>
    %cst = arith.constant dense<0.000000e+00> : vector<16x32xf32>
    %7 = tpu.matmul %5, %6, %cst {dimension_numbers = #tpu.dot_dimension_numbers<[1], [0], [0], [1], [0, 0, 1, 1], [], []>} : vector<16x16xbf16>, vector<16x32xbf16>, vector<16x32xf32> -> vector<16x32xf32>
    %8 = vector.broadcast %0 : vector<1x32xf32> to vector<16x32xf32>
    %9 = arith.addf %7, %8 : vector<16x32xf32>
    %10 = math.tanh %9 : vector<16x32xf32>
    %11 = arith.truncf %10 : vector<16x32xf32> to vector<16x32xbf16>
    %c0_8 = arith.constant 0 : index
    %c0_9 = arith.constant 0 : index
    %12 = vector.load %arg3[%c0_8, %c0_9] : memref<32x32xbf16, #tpu.memory_space<vmem>>, vector<32x32xbf16>
    %cst_10 = arith.constant dense<0.000000e+00> : vector<16x32xf32>
    %13 = tpu.matmul %11, %12, %cst_10 {dimension_numbers = #tpu.dot_dimension_numbers<[1], [0], [0], [1], [0, 0, 1, 1], [], []>} : vector<16x32xbf16>, vector<32x32xbf16>, vector<16x32xf32> -> vector<16x32xf32>
    %14 = vector.broadcast %1 : vector<1x32xf32> to vector<16x32xf32>
    %15 = arith.addf %13, %14 : vector<16x32xf32>
    %c0_11 = arith.constant 0 : index
    %c0_12 = arith.constant 0 : index
    %16 = vector.load %arg1[%c0_11, %c0_12] : memref<16x32xf32, #tpu.memory_space<vmem>>, vector<16x32xf32>
    %17 = arith.addf %15, %16 : vector<16x32xf32>
    %cst_13 = arith.constant dense<0.000000e+00> : vector<16xf32>
    %18 = vector.multi_reduction <add>, %17, %cst_13 [1] : vector<16x32xf32> to vector<16xf32>
    %19 = vector.shape_cast %18 : vector<16xf32> to vector<16x1xf32>
    %cst_14 = arith.constant 3.200000e+01 : f32
    %20 = vector.broadcast %cst_14 : f32 to vector<16x1xf32>
    %21 = arith.divf %19, %20 : vector<16x1xf32>
    %22 = vector.broadcast %21 : vector<16x1xf32> to vector<16x32xf32>
    %23 = arith.subf %17, %22 : vector<16x32xf32>
    %24 = arith.mulf %23, %23 : vector<16x32xf32>
    %cst_15 = arith.constant dense<0.000000e+00> : vector<16xf32>
    %25 = vector.multi_reduction <add>, %24, %cst_15 [1] : vector<16x32xf32> to vector<16xf32>
    %26 = vector.shape_cast %25 : vector<16xf32> to vector<16x1xf32>
    %cst_16 = arith.constant 3.200000e+01 : f32
    %27 = vector.broadcast %cst_16 : f32 to vector<16x1xf32>
    %28 = arith.divf %26, %27 : vector<16x1xf32>
    %29 = vector.broadcast %21 : vector<16x1xf32> to vector<16x32xf32>
    %30 = arith.subf %17, %29 : vector<16x32xf32>
    %cst_17 = arith.constant 9.99999996E-13 : f32
    %31 = vector.broadcast %cst_17 : f32 to vector<16x1xf32>
    %32 = arith.addf %28, %31 : vector<16x1xf32>
    %33 = math.rsqrt %32 : vector<16x1xf32>
    %34 = vector.broadcast %33 : vector<16x1xf32> to vector<16x32xf32>
    %35 = arith.mulf %30, %34 : vector<16x32xf32>
    %36 = vector.broadcast %2 : vector<1x32xf32> to vector<16x32xf32>
    %37 = arith.mulf %35, %36 : vector<16x32xf32>
    %38 = vector.broadcast %3 : vector<1x32xf32> to vector<16x32xf32>
    %39 = arith.addf %37, %38 : vector<16x32xf32>
    %c0_18 = arith.constant 0 : index
    %c0_19 = arith.constant 0 : index
    %40 = vector.load %arg5[%c0_18, %c0_19] : memref<16x32xf32, #tpu.memory_space<vmem>>, vector<16x32xf32>
    tpu.vector_store %arg5[%c0_18, %c0_19], %39 {strides = array<i32>} : memref<16x32xf32, #tpu.memory_space<vmem>>, vector<16x32xf32>,
    return
  }
}

module attributes {stable_mosaic.version = 11 : i64} {
  func.func @layers_kernel(%arg0: i32, %arg1: memref<16x32xf32, #tpu.memory_space<vmem>>, %arg2: memref<1x32x96xbf16, #tpu.memory_space<vmem>>, %arg3: memref<1x32x32xbf16, #tpu.memory_space<vmem>>, %arg4: memref<1x32x64xbf16, #tpu.memory_space<vmem>>, %arg5: memref<1x64x32xbf16, #tpu.memory_space<vmem>>, %arg6: memref<1x8x96xf32, #tpu.memory_space<vmem>>, %arg7: memref<16x32xf32, #tpu.memory_space<vmem>>) attributes {dimension_semantics = [#tpu.dimension_semantics<arbitrary>], iteration_bounds = array<i64: 2>, scalar_prefetch = 0 : i64, scratch_operands = 0 : i64, tpu.core_type = #tpu.core_type<tc>, window_params = [{pipeline_mode = #tpu.pipeline_mode<synchronous>, transform_indices = @transform_0, window_bounds = array<i64: 16, 32>}, {transform_indices = @transform_1, window_bounds = array<i64: 1, 32, 96>}, {transform_indices = @transform_2, window_bounds = array<i64: 1, 32, 32>}, {transform_indices = @transform_3, window_bounds = array<i64: 1, 32, 64>}, {transform_indices = @transform_4, window_bounds = array<i64: 1, 64, 32>}, {transform_indices = @transform_5, window_bounds = array<i64: 1, 8, 96>}, {pipeline_mode = #tpu.pipeline_mode<synchronous>, transform_indices = @transform_6, window_bounds = array<i64: 16, 32>}]} {
    %c0_i32 = arith.constant 0 : i32
    %0 = arith.cmpi eq, %arg0, %c0_i32 : i32
    %1 = arith.extui %0 : i1 to i32
    %c0_i32_0 = arith.constant 0 : i32
    %2 = arith.cmpi ne, %1, %c0_i32_0 : i32
    scf.if %2 {
      %c0_56 = arith.constant 0 : index
      %c0_57 = arith.constant 0 : index
      %202 = vector.load %arg1[%c0_56, %c0_57] : memref<16x32xf32, #tpu.memory_space<vmem>>, vector<16x32xf32>
      %c0_58 = arith.constant 0 : index
      %c0_59 = arith.constant 0 : index
      %203 = vector.load %arg7[%c0_58, %c0_59] : memref<16x32xf32, #tpu.memory_space<vmem>>, vector<16x32xf32>
      tpu.vector_store %arg7[%c0_58, %c0_59], %202 {strides = array<i32>} : memref<16x32xf32, #tpu.memory_space<vmem>>, vector<16x32xf32>,
    } else {
    }
    %c0 = arith.constant 0 : index
    %c0_1 = arith.constant 0 : index
    %3 = vector.load %arg7[%c0, %c0_1] : memref<16x32xf32, #tpu.memory_space<vmem>>, vector<16x32xf32>
    %c0_2 = arith.constant 0 : index
    %c0_3 = arith.constant 0 : index
    %c0_4 = arith.constant 0 : index
    %4 = vector.load %arg6[%c0_2, %c0_3, %c0_4] : memref<1x8x96xf32, #tpu.memory_space<vmem>>, vector<1x8x96xf32>
    %5 = vector.shape_cast %4 : vector<1x8x96xf32> to vector<8x96xf32>
    %6 = vector.extract_strided_slice %5 {offsets = [0, 0], sizes = [1, 96], strides = [1, 1]} : vector<8x96xf32> to vector<1x96xf32>
    %7 = vector.extract_strided_slice %5 {offsets = [1, 0], sizes = [1, 32], strides = [1, 1]} : vector<8x96xf32> to vector<1x32xf32>
    %8 = vector.extract_strided_slice %5 {offsets = [2, 0], sizes = [1, 32], strides = [1, 1]} : vector<8x96xf32> to vector<1x32xf32>
    %9 = vector.extract_strided_slice %5 {offsets = [3, 0], sizes = [1, 32], strides = [1, 1]} : vector<8x96xf32> to vector<1x32xf32>
    %10 = vector.extract_strided_slice %5 {offsets = [4, 0], sizes = [1, 64], strides = [1, 1]} : vector<8x96xf32> to vector<1x64xf32>
    %11 = vector.extract_strided_slice %5 {offsets = [5, 0], sizes = [1, 32], strides = [1, 1]} : vector<8x96xf32> to vector<1x32xf32>
    %12 = vector.extract_strided_slice %5 {offsets = [6, 0], sizes = [1, 32], strides = [1, 1]} : vector<8x96xf32> to vector<1x32xf32>
    %13 = vector.extract_strided_slice %5 {offsets = [7, 0], sizes = [1, 32], strides = [1, 1]} : vector<8x96xf32> to vector<1x32xf32>
    %14 = arith.truncf %3 : vector<16x32xf32> to vector<16x32xbf16>
    %c0_5 = arith.constant 0 : index
    %c0_6 = arith.constant 0 : index
    %c0_7 = arith.constant 0 : index
    %15 = vector.load %arg2[%c0_5, %c0_6, %c0_7] : memref<1x32x96xbf16, #tpu.memory_space<vmem>>, vector<1x32x96xbf16>
    %16 = vector.shape_cast %15 : vector<1x32x96xbf16> to vector<32x96xbf16>
    %cst = arith.constant dense<0.000000e+00> : vector<16x96xf32>
    %17 = tpu.matmul %14, %16, %cst {dimension_numbers = #tpu.dot_dimension_numbers<[1], [0], [0], [1], [0, 0, 1, 1], [], []>} : vector<16x32xbf16>, vector<32x96xbf16>, vector<16x96xf32> -> vector<16x96xf32>
    %18 = vector.broadcast %6 : vector<1x96xf32> to vector<16x96xf32>
    %19 = arith.addf %17, %18 : vector<16x96xf32>
    %20 = vector.extract_strided_slice %19 {offsets = [0, 0], sizes = [16, 32], strides = [1, 1]} : vector<16x96xf32> to vector<16x32xf32>
    %21 = vector.extract_strided_slice %19 {offsets = [0, 32], sizes = [16, 32], strides = [1, 1]} : vector<16x96xf32> to vector<16x32xf32>
    %22 = vector.extract_strided_slice %19 {offsets = [0, 64], sizes = [16, 32], strides = [1, 1]} : vector<16x96xf32> to vector<16x32xf32>
    %23 = vector.extract_strided_slice %20 {offsets = [0, 0], sizes = [16, 8], strides = [1, 1]} : vector<16x32xf32> to vector<16x8xf32>
    %24 = vector.shape_cast %23 : vector<16x8xf32> to vector<2x8x8xf32>
    %25 = arith.truncf %24 : vector<2x8x8xf32> to vector<2x8x8xbf16>
    %26 = vector.extract_strided_slice %21 {offsets = [0, 0], sizes = [16, 8], strides = [1, 1]} : vector<16x32xf32> to vector<16x8xf32>
    %27 = vector.shape_cast %26 : vector<16x8xf32> to vector<2x8x8xf32>
    %28 = arith.truncf %27 : vector<2x8x8xf32> to vector<2x8x8xbf16>
    %29 = vector.extract_strided_slice %22 {offsets = [0, 0], sizes = [16, 8], strides = [1, 1]} : vector<16x32xf32> to vector<16x8xf32>
    %30 = vector.shape_cast %29 : vector<16x8xf32> to vector<2x8x8xf32>
    %31 = arith.truncf %30 : vector<2x8x8xf32> to vector<2x8x8xbf16>
    "tpu.trace_start"() <{level = 10 : i32, message = "bqd,bkd->bqk"}> : () -> ()
    %cst_8 = arith.constant dense<0.000000e+00> : vector<2x8x8xf32>
    %32 = tpu.matmul %25, %28, %cst_8 {dimension_numbers = #tpu.dot_dimension_numbers<[2], [2], [1], [1], [0, 0, 0, 1, 1, 1], [0], [0]>} : vector<2x8x8xbf16>, vector<2x8x8xbf16>, vector<2x8x8xf32> -> vector<2x8x8xf32>
    "tpu.trace_stop"() : () -> ()
    %cst_9 = arith.constant 0.353553385 : f32
    %33 = vector.broadcast %cst_9 : f32 to vector<2x8x8xf32>
    %34 = arith.mulf %32, %33 : vector<2x8x8xf32>
    %cst_10 = arith.constant dense<0xFF800000> : vector<2x8xf32>
    %35 = vector.multi_reduction <maximumf>, %34, %cst_10 [2] : vector<2x8x8xf32> to vector<2x8xf32>
    %36 = vector.shape_cast %35 : vector<2x8xf32> to vector<2x8x1xf32>
    %37 = vector.broadcast %36 : vector<2x8x1xf32> to vector<2x8x8xf32>
    %38 = arith.subf %34, %37 : vector<2x8x8xf32>
    %39 = math.exp %38 : vector<2x8x8xf32>
    %cst_11 = arith.constant dense<0.000000e+00> : vector<2x8xf32>
    %40 = vector.multi_reduction <add>, %39, %cst_11 [2] : vector<2x8x8xf32> to vector<2x8xf32>
    %41 = vector.shape_cast %40 : vector<2x8xf32> to vector<2x8x1xf32>
    %42 = tpu.reciprocal %41 {approx = true} : vector<2x8x1xf32> -> vector<2x8x1xf32>
    %43 = vector.broadcast %42 : vector<2x8x1xf32> to vector<2x8x8xf32>
    %44 = arith.mulf %39, %43 : vector<2x8x8xf32>
    %45 = arith.truncf %44 : vector<2x8x8xf32> to vector<2x8x8xbf16>
    "tpu.trace_start"() <{level = 10 : i32, message = "bqk,bkd->bqd"}> : () -> ()
    %cst_12 = arith.constant dense<0.000000e+00> : vector<2x8x8xf32>
    %46 = tpu.matmul %45, %31, %cst_12 {dimension_numbers = #tpu.dot_dimension_numbers<[2], [1], [1], [2], [0, 0, 0, 1, 1, 2], [0], [0]>} : vector<2x8x8xbf16>, vector<2x8x8xbf16>, vector<2x8x8xf32> -> vector<2x8x8xf32>
    "tpu.trace_stop"() : () -> ()
    %47 = vector.shape_cast %46 : vector<2x8x8xf32> to vector<16x8xf32>
    %48 = vector.extract_strided_slice %20 {offsets = [0, 8], sizes = [16, 8], strides = [1, 1]} : vector<16x32xf32> to vector<16x8xf32>
    %49 = vector.shape_cast %48 : vector<16x8xf32> to vector<2x8x8xf32>
    %50 = arith.truncf %49 : vector<2x8x8xf32> to vector<2x8x8xbf16>
    %51 = vector.extract_strided_slice %21 {offsets = [0, 8], sizes = [16, 8], strides = [1, 1]} : vector<16x32xf32> to vector<16x8xf32>
    %52 = vector.shape_cast %51 : vector<16x8xf32> to vector<2x8x8xf32>
    %53 = arith.truncf %52 : vector<2x8x8xf32> to vector<2x8x8xbf16>
    %54 = vector.extract_strided_slice %22 {offsets = [0, 8], sizes = [16, 8], strides = [1, 1]} : vector<16x32xf32> to vector<16x8xf32>
    %55 = vector.shape_cast %54 : vector<16x8xf32> to vector<2x8x8xf32>
    %56 = arith.truncf %55 : vector<2x8x8xf32> to vector<2x8x8xbf16>
    "tpu.trace_start"() <{level = 10 : i32, message = "bqd,bkd->bqk"}> : () -> ()
    %cst_13 = arith.constant dense<0.000000e+00> : vector<2x8x8xf32>
    %57 = tpu.matmul %50, %53, %cst_13 {dimension_numbers = #tpu.dot_dimension_numbers<[2], [2], [1], [1], [0, 0, 0, 1, 1, 1], [0], [0]>} : vector<2x8x8xbf16>, vector<2x8x8xbf16>, vector<2x8x8xf32> -> vector<2x8x8xf32>
    "tpu.trace_stop"() : () -> ()
    %cst_14 = arith.constant 0.353553385 : f32
    %58 = vector.broadcast %cst_14 : f32 to vector<2x8x8xf32>
    %59 = arith.mulf %57, %58 : vector<2x8x8xf32>
    %cst_15 = arith.constant dense<0xFF800000> : vector<2x8xf32>
    %60 = vector.multi_reduction <maximumf>, %59, %cst_15 [2] : vector<2x8x8xf32> to vector<2x8xf32>
    %61 = vector.shape_cast %60 : vector<2x8xf32> to vector<2x8x1xf32>
    %62 = vector.broadcast %61 : vector<2x8x1xf32> to vector<2x8x8xf32>
    %63 = arith.subf %59, %62 : vector<2x8x8xf32>
    %64 = math.exp %63 : vector<2x8x8xf32>
    %cst_16 = arith.constant dense<0.000000e+00> : vector<2x8xf32>
    %65 = vector.multi_reduction <add>, %64, %cst_16 [2] : vector<2x8x8xf32> to vector<2x8xf32>
    %66 = vector.shape_cast %65 : vector<2x8xf32> to vector<2x8x1xf32>
    %67 = tpu.reciprocal %66 {approx = true} : vector<2x8x1xf32> -> vector<2x8x1xf32>
    %68 = vector.broadcast %67 : vector<2x8x1xf32> to vector<2x8x8xf32>
    %69 = arith.mulf %64, %68 : vector<2x8x8xf32>
    %70 = arith.truncf %69 : vector<2x8x8xf32> to vector<2x8x8xbf16>
    "tpu.trace_start"() <{level = 10 : i32, message = "bqk,bkd->bqd"}> : () -> ()
    %cst_17 = arith.constant dense<0.000000e+00> : vector<2x8x8xf32>
    %71 = tpu.matmul %70, %56, %cst_17 {dimension_numbers = #tpu.dot_dimension_numbers<[2], [1], [1], [2], [0, 0, 0, 1, 1, 2], [0], [0]>} : vector<2x8x8xbf16>, vector<2x8x8xbf16>, vector<2x8x8xf32> -> vector<2x8x8xf32>
    "tpu.trace_stop"() : () -> ()
    %72 = vector.shape_cast %71 : vector<2x8x8xf32> to vector<16x8xf32>
    %73 = vector.extract_strided_slice %20 {offsets = [0, 16], sizes = [16, 8], strides = [1, 1]} : vector<16x32xf32> to vector<16x8xf32>
    %74 = vector.shape_cast %73 : vector<16x8xf32> to vector<2x8x8xf32>
    %75 = arith.truncf %74 : vector<2x8x8xf32> to vector<2x8x8xbf16>
    %76 = vector.extract_strided_slice %21 {offsets = [0, 16], sizes = [16, 8], strides = [1, 1]} : vector<16x32xf32> to vector<16x8xf32>
    %77 = vector.shape_cast %76 : vector<16x8xf32> to vector<2x8x8xf32>
    %78 = arith.truncf %77 : vector<2x8x8xf32> to vector<2x8x8xbf16>
    %79 = vector.extract_strided_slice %22 {offsets = [0, 16], sizes = [16, 8], strides = [1, 1]} : vector<16x32xf32> to vector<16x8xf32>
    %80 = vector.shape_cast %79 : vector<16x8xf32> to vector<2x8x8xf32>
    %81 = arith.truncf %80 : vector<2x8x8xf32> to vector<2x8x8xbf16>
    "tpu.trace_start"() <{level = 10 : i32, message = "bqd,bkd->bqk"}> : () -> ()
    %cst_18 = arith.constant dense<0.000000e+00> : vector<2x8x8xf32>
    %82 = tpu.matmul %75, %78, %cst_18 {dimension_numbers = #tpu.dot_dimension_numbers<[2], [2], [1], [1], [0, 0, 0, 1, 1, 1], [0], [0]>} : vector<2x8x8xbf16>, vector<2x8x8xbf16>, vector<2x8x8xf32> -> vector<2x8x8xf32>
    "tpu.trace_stop"() : () -> ()
    %cst_19 = arith.constant 0.353553385 : f32
    %83 = vector.broadcast %cst_19 : f32 to vector<2x8x8xf32>
    %84 = arith.mulf %82, %83 : vector<2x8x8xf32>
    %cst_20 = arith.constant dense<0xFF800000> : vector<2x8xf32>
    %85 = vector.multi_reduction <maximumf>, %84, %cst_20 [2] : vector<2x8x8xf32> to vector<2x8xf32>
    %86 = vector.shape_cast %85 : vector<2x8xf32> to vector<2x8x1xf32>
    %87 = vector.broadcast %86 : vector<2x8x1xf32> to vector<2x8x8xf32>
    %88 = arith.subf %84, %87 : vector<2x8x8xf32>
    %89 = math.exp %88 : vector<2x8x8xf32>
    %cst_21 = arith.constant dense<0.000000e+00> : vector<2x8xf32>
    %90 = vector.multi_reduction <add>, %89, %cst_21 [2] : vector<2x8x8xf32> to vector<2x8xf32>
    %91 = vector.shape_cast %90 : vector<2x8xf32> to vector<2x8x1xf32>
    %92 = tpu.reciprocal %91 {approx = true} : vector<2x8x1xf32> -> vector<2x8x1xf32>
    %93 = vector.broadcast %92 : vector<2x8x1xf32> to vector<2x8x8xf32>
    %94 = arith.mulf %89, %93 : vector<2x8x8xf32>
    %95 = arith.truncf %94 : vector<2x8x8xf32> to vector<2x8x8xbf16>
    "tpu.trace_start"() <{level = 10 : i32, message = "bqk,bkd->bqd"}> : () -> ()
    %cst_22 = arith.constant dense<0.000000e+00> : vector<2x8x8xf32>
    %96 = tpu.matmul %95, %81, %cst_22 {dimension_numbers = #tpu.dot_dimension_numbers<[2], [1], [1], [2], [0, 0, 0, 1, 1, 2], [0], [0]>} : vector<2x8x8xbf16>, vector<2x8x8xbf16>, vector<2x8x8xf32> -> vector<2x8x8xf32>
    "tpu.trace_stop"() : () -> ()
    %97 = vector.shape_cast %96 : vector<2x8x8xf32> to vector<16x8xf32>
    %98 = vector.extract_strided_slice %20 {offsets = [0, 24], sizes = [16, 8], strides = [1, 1]} : vector<16x32xf32> to vector<16x8xf32>
    %99 = vector.shape_cast %98 : vector<16x8xf32> to vector<2x8x8xf32>
    %100 = arith.truncf %99 : vector<2x8x8xf32> to vector<2x8x8xbf16>
    %101 = vector.extract_strided_slice %21 {offsets = [0, 24], sizes = [16, 8], strides = [1, 1]} : vector<16x32xf32> to vector<16x8xf32>
    %102 = vector.shape_cast %101 : vector<16x8xf32> to vector<2x8x8xf32>
    %103 = arith.truncf %102 : vector<2x8x8xf32> to vector<2x8x8xbf16>
    %104 = vector.extract_strided_slice %22 {offsets = [0, 24], sizes = [16, 8], strides = [1, 1]} : vector<16x32xf32> to vector<16x8xf32>
    %105 = vector.shape_cast %104 : vector<16x8xf32> to vector<2x8x8xf32>
    %106 = arith.truncf %105 : vector<2x8x8xf32> to vector<2x8x8xbf16>
    "tpu.trace_start"() <{level = 10 : i32, message = "bqd,bkd->bqk"}> : () -> ()
    %cst_23 = arith.constant dense<0.000000e+00> : vector<2x8x8xf32>
    %107 = tpu.matmul %100, %103, %cst_23 {dimension_numbers = #tpu.dot_dimension_numbers<[2], [2], [1], [1], [0, 0, 0, 1, 1, 1], [0], [0]>} : vector<2x8x8xbf16>, vector<2x8x8xbf16>, vector<2x8x8xf32> -> vector<2x8x8xf32>
    "tpu.trace_stop"() : () -> ()
    %cst_24 = arith.constant 0.353553385 : f32
    %108 = vector.broadcast %cst_24 : f32 to vector<2x8x8xf32>
    %109 = arith.mulf %107, %108 : vector<2x8x8xf32>
    %cst_25 = arith.constant dense<0xFF800000> : vector<2x8xf32>
    %110 = vector.multi_reduction <maximumf>, %109, %cst_25 [2] : vector<2x8x8xf32> to vector<2x8xf32>
    %111 = vector.shape_cast %110 : vector<2x8xf32> to vector<2x8x1xf32>
    %112 = vector.broadcast %111 : vector<2x8x1xf32> to vector<2x8x8xf32>
    %113 = arith.subf %109, %112 : vector<2x8x8xf32>
    %114 = math.exp %113 : vector<2x8x8xf32>
    %cst_26 = arith.constant dense<0.000000e+00> : vector<2x8xf32>
    %115 = vector.multi_reduction <add>, %114, %cst_26 [2] : vector<2x8x8xf32> to vector<2x8xf32>
    %116 = vector.shape_cast %115 : vector<2x8xf32> to vector<2x8x1xf32>
    %117 = tpu.reciprocal %116 {approx = true} : vector<2x8x1xf32> -> vector<2x8x1xf32>
    %118 = vector.broadcast %117 : vector<2x8x1xf32> to vector<2x8x8xf32>
    %119 = arith.mulf %114, %118 : vector<2x8x8xf32>
    %120 = arith.truncf %119 : vector<2x8x8xf32> to vector<2x8x8xbf16>
    "tpu.trace_start"() <{level = 10 : i32, message = "bqk,bkd->bqd"}> : () -> ()
    %cst_27 = arith.constant dense<0.000000e+00> : vector<2x8x8xf32>
    %121 = tpu.matmul %120, %106, %cst_27 {dimension_numbers = #tpu.dot_dimension_numbers<[2], [1], [1], [2], [0, 0, 0, 1, 1, 2], [0], [0]>} : vector<2x8x8xbf16>, vector<2x8x8xbf16>, vector<2x8x8xf32> -> vector<2x8x8xf32>
    "tpu.trace_stop"() : () -> ()
    %122 = vector.shape_cast %121 : vector<2x8x8xf32> to vector<16x8xf32>
    %123 = tpu.concatenate %47, %72, %97, %122 in 1 : vector<16x8xf32>, vector<16x8xf32>, vector<16x8xf32>, vector<16x8xf32> -> vector<16x32xf32>
    %124 = arith.truncf %123 : vector<16x32xf32> to vector<16x32xbf16>
    %c0_28 = arith.constant 0 : index
    %c0_29 = arith.constant 0 : index
    %c0_30 = arith.constant 0 : index
    %125 = vector.load %arg3[%c0_28, %c0_29, %c0_30] : memref<1x32x32xbf16, #tpu.memory_space<vmem>>, vector<1x32x32xbf16>
    %126 = vector.shape_cast %125 : vector<1x32x32xbf16> to vector<32x32xbf16>
    %cst_31 = arith.constant dense<0.000000e+00> : vector<16x32xf32>
    %127 = tpu.matmul %124, %126, %cst_31 {dimension_numbers = #tpu.dot_dimension_numbers<[1], [0], [0], [1], [0, 0, 1, 1], [], []>} : vector<16x32xbf16>, vector<32x32xbf16>, vector<16x32xf32> -> vector<16x32xf32>
    %128 = vector.broadcast %7 : vector<1x32xf32> to vector<16x32xf32>
    %129 = arith.addf %127, %128 : vector<16x32xf32>
    %130 = arith.addf %129, %3 : vector<16x32xf32>
    %cst_32 = arith.constant dense<0.000000e+00> : vector<16xf32>
    %131 = vector.multi_reduction <add>, %130, %cst_32 [1] : vector<16x32xf32> to vector<16xf32>
    %132 = vector.shape_cast %131 : vector<16xf32> to vector<16x1xf32>
    %cst_33 = arith.constant 3.200000e+01 : f32
    %133 = vector.broadcast %cst_33 : f32 to vector<16x1xf32>
    %134 = arith.divf %132, %133 : vector<16x1xf32>
    %135 = vector.broadcast %134 : vector<16x1xf32> to vector<16x32xf32>
    %136 = arith.subf %130, %135 : vector<16x32xf32>
    %137 = arith.mulf %136, %136 : vector<16x32xf32>
    %cst_34 = arith.constant dense<0.000000e+00> : vector<16xf32>
    %138 = vector.multi_reduction <add>, %137, %cst_34 [1] : vector<16x32xf32> to vector<16xf32>
    %139 = vector.shape_cast %138 : vector<16xf32> to vector<16x1xf32>
    %cst_35 = arith.constant 3.200000e+01 : f32
    %140 = vector.broadcast %cst_35 : f32 to vector<16x1xf32>
    %141 = arith.divf %139, %140 : vector<16x1xf32>
    %142 = vector.broadcast %134 : vector<16x1xf32> to vector<16x32xf32>
    %143 = arith.subf %130, %142 : vector<16x32xf32>
    %cst_36 = arith.constant 9.99999996E-13 : f32
    %144 = vector.broadcast %cst_36 : f32 to vector<16x1xf32>
    %145 = arith.addf %141, %144 : vector<16x1xf32>
    %146 = math.rsqrt %145 : vector<16x1xf32>
    %147 = vector.broadcast %146 : vector<16x1xf32> to vector<16x32xf32>
    %148 = arith.mulf %143, %147 : vector<16x32xf32>
    %149 = vector.broadcast %8 : vector<1x32xf32> to vector<16x32xf32>
    %150 = arith.mulf %148, %149 : vector<16x32xf32>
    %151 = vector.broadcast %9 : vector<1x32xf32> to vector<16x32xf32>
    %152 = arith.addf %150, %151 : vector<16x32xf32>
    %153 = arith.truncf %152 : vector<16x32xf32> to vector<16x32xbf16>
    %c0_37 = arith.constant 0 : index
    %c0_38 = arith.constant 0 : index
    %c0_39 = arith.constant 0 : index
    %154 = vector.load %arg4[%c0_37, %c0_38, %c0_39] : memref<1x32x64xbf16, #tpu.memory_space<vmem>>, vector<1x32x64xbf16>
    %155 = vector.shape_cast %154 : vector<1x32x64xbf16> to vector<32x64xbf16>
    %cst_40 = arith.constant dense<0.000000e+00> : vector<16x64xf32>
    %156 = tpu.matmul %153, %155, %cst_40 {dimension_numbers = #tpu.dot_dimension_numbers<[1], [0], [0], [1], [0, 0, 1, 1], [], []>} : vector<16x32xbf16>, vector<32x64xbf16>, vector<16x64xf32> -> vector<16x64xf32>
    %157 = vector.broadcast %10 : vector<1x64xf32> to vector<16x64xf32>
    %158 = arith.addf %156, %157 : vector<16x64xf32>
    %cst_41 = arith.constant 5.000000e-01 : f32
    %159 = vector.broadcast %cst_41 : f32 to vector<16x64xf32>
    %160 = arith.mulf %159, %158 : vector<16x64xf32>
    %cst_42 = arith.constant 4.471500e-02 : f32
    %161 = vector.broadcast %cst_42 : f32 to vector<16x64xf32>
    %162 = arith.mulf %161, %158 : vector<16x64xf32>
    %163 = arith.mulf %162, %158 : vector<16x64xf32>
    %164 = arith.mulf %163, %158 : vector<16x64xf32>
    %165 = arith.addf %158, %164 : vector<16x64xf32>
    %cst_43 = arith.constant 0.797884583 : f32
    %166 = vector.broadcast %cst_43 : f32 to vector<16x64xf32>
    %167 = arith.mulf %166, %165 : vector<16x64xf32>
    %168 = math.tanh %167 : vector<16x64xf32>
    %cst_44 = arith.constant 1.000000e+00 : f32
    %169 = vector.broadcast %cst_44 : f32 to vector<16x64xf32>
    %170 = arith.addf %169, %168 : vector<16x64xf32>
    %171 = arith.mulf %160, %170 : vector<16x64xf32>
    %172 = arith.truncf %171 : vector<16x64xf32> to vector<16x64xbf16>
    %c0_45 = arith.constant 0 : index
    %c0_46 = arith.constant 0 : index
    %c0_47 = arith.constant 0 : index
    %173 = vector.load %arg5[%c0_45, %c0_46, %c0_47] : memref<1x64x32xbf16, #tpu.memory_space<vmem>>, vector<1x64x32xbf16>
    %174 = vector.shape_cast %173 : vector<1x64x32xbf16> to vector<64x32xbf16>
    %cst_48 = arith.constant dense<0.000000e+00> : vector<16x32xf32>
    %175 = tpu.matmul %172, %174, %cst_48 {dimension_numbers = #tpu.dot_dimension_numbers<[1], [0], [0], [1], [0, 0, 1, 1], [], []>} : vector<16x64xbf16>, vector<64x32xbf16>, vector<16x32xf32> -> vector<16x32xf32>
    %176 = vector.broadcast %11 : vector<1x32xf32> to vector<16x32xf32>
    %177 = arith.addf %175, %176 : vector<16x32xf32>
    %178 = arith.addf %177, %152 : vector<16x32xf32>
    %cst_49 = arith.constant dense<0.000000e+00> : vector<16xf32>
    %179 = vector.multi_reduction <add>, %178, %cst_49 [1] : vector<16x32xf32> to vector<16xf32>
    %180 = vector.shape_cast %179 : vector<16xf32> to vector<16x1xf32>
    %cst_50 = arith.constant 3.200000e+01 : f32
    %181 = vector.broadcast %cst_50 : f32 to vector<16x1xf32>
    %182 = arith.divf %180, %181 : vector<16x1xf32>
    %183 = vector.broadcast %182 : vector<16x1xf32> to vector<16x32xf32>
    %184 = arith.subf %178, %183 : vector<16x32xf32>
    %185 = arith.mulf %184, %184 : vector<16x32xf32>
    %cst_51 = arith.constant dense<0.000000e+00> : vector<16xf32>
    %186 = vector.multi_reduction <add>, %185, %cst_51 [1] : vector<16x32xf32> to vector<16xf32>
    %187 = vector.shape_cast %186 : vector<16xf32> to vector<16x1xf32>
    %cst_52 = arith.constant 3.200000e+01 : f32
    %188 = vector.broadcast %cst_52 : f32 to vector<16x1xf32>
    %189 = arith.divf %187, %188 : vector<16x1xf32>
    %190 = vector.broadcast %182 : vector<16x1xf32> to vector<16x32xf32>
    %191 = arith.subf %178, %190 : vector<16x32xf32>
    %cst_53 = arith.constant 9.99999996E-13 : f32
    %192 = vector.broadcast %cst_53 : f32 to vector<16x1xf32>
    %193 = arith.addf %189, %192 : vector<16x1xf32>
    %194 = math.rsqrt %193 : vector<16x1xf32>
    %195 = vector.broadcast %194 : vector<16x1xf32> to vector<16x32xf32>
    %196 = arith.mulf %191, %195 : vector<16x32xf32>
    %197 = vector.broadcast %12 : vector<1x32xf32> to vector<16x32xf32>
    %198 = arith.mulf %196, %197 : vector<16x32xf32>
    %199 = vector.broadcast %13 : vector<1x32xf32> to vector<16x32xf32>
    %200 = arith.addf %198, %199 : vector<16x32xf32>
    %c0_54 = arith.constant 0 : index
    %c0_55 = arith.constant 0 : index
    %201 = vector.load %arg7[%c0_54, %c0_55] : memref<16x32xf32, #tpu.memory_space<vmem>>, vector<16x32xf32>
    tpu.vector_store %arg7[%c0_54, %c0_55], %200 {strides = array<i32>} : memref<16x32xf32, #tpu.memory_space<vmem>>, vector<16x32xf32>,
    return
  }
  func.func @transform_0(%arg0: i32) -> (i32, i32) {
    %c0_i32 = arith.constant 0 : i32
    %c0_i32_0 = arith.constant 0 : i32
    %c0_i32_1 = arith.constant 0 : i32
    return %c0_i32, %c0_i32_0 : i32, i32
  }
  func.func @transform_1(%arg0: i32) -> (i32, i32, i32) {
    %c0_i32 = arith.constant 0 : i32
    %c0_i32_0 = arith.constant 0 : i32
    %c0_i32_1 = arith.constant 0 : i32
    return %arg0, %c0_i32, %c0_i32_0 : i32, i32, i32
  }
  func.func @transform_2(%arg0: i32) -> (i32, i32, i32) {
    %c0_i32 = arith.constant 0 : i32
    %c0_i32_0 = arith.constant 0 : i32
    %c0_i32_1 = arith.constant 0 : i32
    return %arg0, %c0_i32, %c0_i32_0 : i32, i32, i32
  }
  func.func @transform_3(%arg0: i32) -> (i32, i32, i32) {
    %c0_i32 = arith.constant 0 : i32
    %c0_i32_0 = arith.constant 0 : i32
    %c0_i32_1 = arith.constant 0 : i32
    return %arg0, %c0_i32, %c0_i32_0 : i32, i32, i32
  }
  func.func @transform_4(%arg0: i32) -> (i32, i32, i32) {
    %c0_i32 = arith.constant 0 : i32
    %c0_i32_0 = arith.constant 0 : i32
    %c0_i32_1 = arith.constant 0 : i32
    return %arg0, %c0_i32, %c0_i32_0 : i32, i32, i32
  }
  func.func @transform_5(%arg0: i32) -> (i32, i32, i32) {
    %c0_i32 = arith.constant 0 : i32
    %c0_i32_0 = arith.constant 0 : i32
    %c0_i32_1 = arith.constant 0 : i32
    return %arg0, %c0_i32, %c0_i32_0 : i32, i32, i32
  }
  func.func @transform_6(%arg0: i32) -> (i32, i32) {
    %c0_i32 = arith.constant 0 : i32
    %c0_i32_0 = arith.constant 0 : i32
    %c0_i32_1 = arith.constant 0 : i32
    return %c0_i32, %c0_i32_0 : i32, i32
  }
}

</mosaic_0001>

<bundles_post_ra>
// kernel: _lambda_.2
= control target key start
LH: loop header
LB: loop body
LE: loop exit
PB: predicated region body
PF: predicated region fallthrough
CT: control target
= control target key end

     0   :  { %v243_v0 = vmov 0.0   ;;  %vm244_vm0 = vmmov 0   ;;  %vm40_vm1 = vcmask 130048   ;;  %vm108_vm2 = vcmask 261120   ;;  %s321_s2 = inlined_call_operand.vmem [shape: bf16[16,32], index: 2, kind: input, shape index: {}]   ;;  %s322_s0 = inlined_call_operand.vmem [shape: f32[16,16], index: 0, kind: input, shape index: {}]   ;;  %s323_s3 = inlined_call_operand.vmem [shape: bf16[32,32], index: 3, kind: input, shape index: {}]   ;;  %s324_s4 = inlined_call_operand.vmem [shape: f32[4,32], index: 4, kind: input, shape index: {}]   ;;  %s325_s1 = inlined_call_operand.vmem [shape: f32[16,32], index: 1, kind: input, shape index: {}]   ;;  %s326_s5 = inlined_call_operand.vmem [shape: f32[16,32], index: 5, kind: output, shape index: {}]  }
   0x1   :  { %216 = vmatprep.subr.bf16.mxu0 %v243_v0  ;;  %v232_v1 = vld [vmem:[%s321_s2] sm:$0xff]   ;;  %218 = vmatprep.mubr.msk.bf16.mxu0 %vm244_vm0, %v243_v0  ;;  %v26_v3 = vld [vmem:[%s322_s0 + $0x8] sm:$0xff] }
   0x2   :  { %v25_v2 = vld [vmem:[%s322_s0] sm:$0xff]  ;;  %222 = vmatprep.subr.bf16.mxu1 %v243_v0  ;;  %226 = vmatprep.mubr.msk.bf16.mxu1 %vm244_vm0, %v243_v0  ;;  %v234_v6 = vld [vmem:[%s323_s3 + $0x8] sm:$0xff]  }
   0x3   :  { %217 = vmatpush3.bf16.msra.mxu0 %v232_v1  ;;  %v27_v4 = vpack.c.bf16 %v26_v3, %v25_v2  ;;  %v233_v5 = vld [vmem:[%s323_s3] sm:$0xff]   ;;  %v154_v23 = vld [vmem:[%s325_s1 + $0x8] sm:$0xff] }
   0x4   :  { %223 = vmatpush3.bf16.msra.mxu1 %v233_v5  ;;  %v202_v7 = vld [vmem:[%s324_s4] ss:$0 sm:$0xff]  ;;  %v205_v17 = vld [vmem:[%s324_s4 + $0x1] ss:$0 sm:$0xff]  ;;  %v209_v47 = vld [vmem:[%s324_s4 + $0x2] ss:$0 sm:$0xff] }
   0x5   :  { %224 = vmatprep.subr.bf16.mxu1 %v243_v0  ;;  %v153_v19 = vld [vmem:[%s325_s1] sm:$0xff] }
   0x6   :  { %219 = vmatmul.mubr.msk.bf16.vlgmr.msra.gmra.mrb[0].mxu0 %vm40_vm1, %v27_v4  ;;  %v210_v49 = vld [vmem:[%s324_s4 + $0x3] ss:$0 sm:$0xff] }
   0x8   :  { %225 = vmatpush3.bf16.msra.mxu1 %v234_v6 }
  0xd9   :  { %v78_v8 = vpop.f32.mrb[0].mxu0 }
  0xda   :  { %v79_v9 = vadd.f32 %v202_v7, %v78_v8  ;;  %v220_v10 = vpop.f32.mrb[1].mxu0 }
  0xdb   :  { %v81_v11 = vpop.f32.mrb[2].mxu0 }
  0xdc   :  { %v82_v12 = vadd.f32 %v202_v7, %v81_v11  ;;  %v221_v13 = vpop.f32.mrb[3].mxu0  ;;  %235 = vtanh.f32 %v79_v9 }
  0xde   :  { %237 = vtanh.f32 %v82_v12 }
  0xe6   :  { %v236_v14 = vpop.eup %235 }
  0xe8   :  { %v238_v15 = vpop.eup %237 }
  0xe9   :  { %v87_v16 = vpack.c.bf16 %v238_v15, %v236_v14 }
  0xeb   :  { %227 = vmatmul.mubr.msk.bf16.vlgmr.msra.gmra.mrb[0].mxu1 %vm108_vm2, %v87_v16 }
 0x1be   :  { %v146_v18 = vpop.f32.mrb[0].mxu1 }
 0x1bf   :  { %v147_v20 = vadd.f32 %v205_v17, %v146_v18  ;;  %v228_v21 = vpop.f32.mrb[1].mxu1 }
 0x1c0   :  { %v149_v22 = vpop.f32.mrb[2].mxu1 }
 0x1c1   :  { %v150_v24 = vadd.f32 %v205_v17, %v149_v22  ;;  %v229_v25 = vpop.f32.mrb[3].mxu1  ;;  %v155_v26 = vadd.f32 %v153_v19, %v147_v20 }
 0x1c3   :  { %v157_v27 = vsel %vm108_vm2, %v155_v26, 0.0  ;;  %v156_v28 = vadd.f32 %v154_v23, %v150_v24 }
 0x1c4   :  { %158 = vadd.xlane.f32.xlu0 %v157_v27 }
 0x1c5   :  { %v160_v29 = vsel %vm108_vm2, %v156_v28, 0.0 }
 0x1c8   :  { %161 = vadd.xlane.f32.xlu0 %v160_v29 }
 0x251   :  { %v159_v30 = vpop.xlane.xlu0 %158 }
 0x252   :  { %v164_v31 = vmul.f32 0.03125, %v159_v30 }
 0x254   :  { %v166_v32 = vsub.f32 %v155_v26, %v164_v31 }
 0x255   :  { %v162_v33 = vpop.xlane.xlu0 %161 }
 0x256   :  { %v165_v34 = vmul.f32 0.03125, %v162_v33  ;;  %v168_v35 = vmul.f32 %v166_v32, %v166_v32 }
 0x258   :  { %v167_v36 = vsub.f32 %v156_v28, %v165_v34  ;;  %v170_v37 = vsel %vm108_vm2, %v168_v35, 0.0 }
 0x259   :  { %171 = vadd.xlane.f32.xlu1 %v170_v37 }
 0x25a   :  { %v169_v38 = vmul.f32 %v167_v36, %v167_v36 }
 0x25c   :  { %v173_v39 = vsel %vm108_vm2, %v169_v38, 0.0 }
 0x25d   :  { %174 = vadd.xlane.f32.xlu1 %v173_v39 }
 0x2e6   :  { %v172_v40 = vpop.xlane.xlu1 %171 }
 0x2e7   :  { %v176_v41 = vmul.f32 0.03125, %v172_v40 }
 0x2e9   :  { %v178_v42 = vadd.f32 1e-12, %v176_v41 }
 0x2ea   :  { %v175_v43 = vpop.xlane.xlu1 %174 }
 0x2eb   :  { %239 = vrsqrt.f32 %v178_v42  ;;  %v177_v44 = vmul.f32 0.03125, %v175_v43 }
 0x2ed   :  { %v179_v45 = vadd.f32 1e-12, %v177_v44 }
 0x2ef   :  { %241 = vrsqrt.f32 %v179_v45 }
 0x2f5   :  { %v240_v46 = vpop.eup %239 }
 0x2f6   :  { %v182_v48 = vmul.f32 %v240_v46, %v166_v32 }
 0x2f8   :  { %v188_v50 = vmul.f32 %v209_v47, %v182_v48 }
 0x2f9   :  { %v242_v51 = vpop.eup %241 }
 0x2fa   :  { %v194_v52 = vadd.f32 %v210_v49, %v188_v50  ;;  %v183_v53 = vmul.f32 %v242_v51, %v167_v36 }
 0x2fc   :  { %196 = vst.msk [vmem:[%s326_s5] sm:$0xff] %vm108_vm2, %v194_v52  ;;  %v189_v54 = vmul.f32 %v209_v47, %v183_v53 }
 0x2fe   :  { %v195_v55 = vadd.f32 %v210_v49, %v189_v54 }
 0x300   :  { %197 = vst.msk [vmem:[%s326_s5 + $0x8] sm:$0xff] %vm108_vm2, %v195_v55 }

// kernel: _lambda_.3
= control target key start
LH: loop header
LB: loop body
LE: loop exit
PB: predicated region body
PF: predicated region fallthrough
CT: control target
= control target key end

     0   :  { %11 = vsyncpa [#allocation3], 0  ;;  %s2147_s21 = smov 0   ;;  %s2423_s0 = inlined_call_operand.vmem [shape: f32[16,32], index: 0, kind: input, shape index: {}]   ;;  %s2424_s1 = inlined_call_operand.vmem [shape: bf16[2,32,96], index: 1, kind: input, shape index: {}]   ;;  %s2425_s2 = inlined_call_operand.vmem [shape: bf16[2,32,32], index: 2, kind: input, shape index: {}]   ;;  %s2426_s3 = inlined_call_operand.vmem [shape: bf16[2,32,64], index: 3, kind: input, shape index: {}]   ;;  %s2427_s4 = inlined_call_operand.vmem [shape: bf16[2,64,32], index: 4, kind: input, shape index: {}]   ;;  %s2428_s5 = inlined_call_operand.vmem [shape: f32[2,8,96], index: 5, kind: input, shape index: {}]   ;;  %s2429_s6 = inlined_call_operand.hbm [shape: f32[16,32], index: 6, kind: output, shape index: {}]  }
   0x1 LB: > { %s2153_s22 = sadd.s32 4294967295, %s2092_s21   ;;  %p1728_p0 = scmp.ge.s32.totalorder %s2092_s21, 1  ;;  %s2092_s21 = sphi %s2147_s21, %s17_s21  }
   0x2   : > { %p247_p1 = scmp.lt.s32.totalorder %s2092_s21, 3 }
   0x4   : > { %p248_p2 = pnand %p1728_p0, %p247_p1 }
   0x5   : > { %p291_p3 = scmp.lt.s32.totalorder (!%p248_p2), %s2153_s22, 1  ;;  %p1738_p4 = scmp.ne.s32.totalorder (!%p248_p2), %s2153_s22, 0 }
   0x6   : > { %251 = sbr.rel (%p248_p2) target bundleno = 4174 (0x104e), region = 44 }
   0xd   : > { %s292_s23 = scalar_select %p291_p3, %s2153_s22, 1 }
   0xe   : > { %319 = sbr.rel (%p1738_p4) target bundleno = 21 (0x15), region = 48  ;;  %v320_v0 = vld [vmem:[%s2423_s0] sm:$0xff] (!%p1738_p4)  ;;  %vm322_vm0 = vcmask (!%p1738_p4), 261120   ;;  %v321_v1 = vld [vmem:[%s2423_s0 + $0x8] sm:$0xff] (!%p1738_p4) }
   0xf   : > { %s1773_s24 = sshll.u32 %s292_s23, 4  ;;  %s1776_s25 = sshll.u32 %s292_s23, 5  ;;  %323 = vst.msk [vmem:[#allocation2] sm:$0xff] (!%p1738_p4), %vm322_vm0, %v320_v0  ;;  %324 = vst.msk [vmem:[#allocation2 + $0x8] sm:$0xff] (!%p1738_p4), %vm322_vm0, %v321_v1 }
  0x10   : > { %s295_s28 = scalar_lea.vmem %s2424_s1, %s1773_s24  ;;  %s2165_s7 = scalar_lea.vmem %s2425_s2, %s1773_s24 }
  0x11   : > { %s2170_s10 = scalar_lea.vmem %s2426_s3, %s1773_s24  ;;  %s2175_s13 = scalar_lea.vmem %s2427_s4, %s1776_s25 }
  0x12   : > { %s1737_s14 = sshll.u32 %s292_s23, 3 }
  0x13   : > { %s314_s17 = scalar_lea.vmem %s2428_s5, %s1737_s14 }
  0x15 PF: > { %v2002_v2 = vld [vmem:[%s295_s28] sm:$0xff]   ;;  %v2094_v3 = vmov 0.0   ;;  %v2003_v4 = vld [vmem:[%s295_s28 + $0x8] sm:$0xff]   ;;  %vm2095_vm1 = vmmov 0   ;;  %vm349_vm2 = vcmask 261120   ;;  %v333_v8 = vlaneseq  ;;  %s2096_s23 = smov 96  }
  0x16   : > { %1823 = vmatprep.subr.bf16.mxu0 %v2094_v3  ;;  %1831 = vmatprep.subr.bf16.mxu1 %v2094_v3  ;;  %v2191_v5 = vld [vmem:[#allocation2] sm:$0xff]  ;;  %v2193_v6 = vld [vmem:[#allocation2 + $0x8] sm:$0xff]  ;;  %vm399_vm3 = vcmask 64512   ;;  %s2097_s25 = smov 64   ;;  %s2098_s26 = smov 88   ;;  %vm526_vm4 = vcmask 1043456  }
  0x17   : > { %1824 = vmatpush3.bf16.msra.mxu0 %v2002_v2  ;;  %1827 = vmatprep.mubr.msk.bf16.mxu0 %vm2095_vm1, %v2094_v3  ;;  %v328_v7 = vpack.c.bf16 %v2193_v6, %v2191_v5  ;;  %v2204_v9 = vshrl.u32 %v333_v8, 7  ;;  %v2207_v11 = vld [vmem:[%s314_s17] sm:$0xff]  ;;  %s2099_s27 = smov 120   ;;  %s2100_s28 = smov 56   ;;  %vm1310_vm5 = vcmask 130048   ;;  %vm1313_vm6 = vcmask 195584  }
  0x18   : > { %1825 = vmatprep.subr.bf16.mxu0 %v2094_v3  ;;  %1833 = vmatprep.mubr.msk.bf16.mxu1 %vm2095_vm1, %v2094_v3  ;;  %s2101_s29 = smov 80   ;;  %s2102_s30 = smov 112   ;;  %vm1542_vm7 = vcmask 523264  }
  0x19   : > { %v335_v10 = vsub.s32 0, %v2204_v9  ;;  %s2103_s8 = smov 48   ;;  %s2104_s9 = smov 72  }
  0x1a   : > { %s2105_s11 = smov 104   ;;  %s2106_s12 = smov 40  }
  0x1b   : > { %1826 = vmatpush3.bf16.msra.mxu0 %v2003_v4  ;;  %v336_v12 = vrot.slane %v2207_v11, %v335_v10  ;;  %s2107_s14 = smov 8   ;;  %s2108_s15 = smov 16  }
  0x1c   : > { %1837 = vmatprep.subr.bf16.mxu0 %v2094_v3  ;;  %s2109_s16 = smov 24   ;;  %p1959_p5 = scmp.eq.s32.totalorder %s2153_s22, 1 }
  0x1e   : > { %1828 = vmatmul.mubr.msk.bf16.vlgmr.msra.gmra.mrb[0].mxu0 %vm349_vm2, %v328_v7 }
  0x1f   : > { %1839 = vmatprep.mubr.msk.bf16.mxu0 %vm2095_vm1, %v2094_v3 }
  0xf1   : > { %v387_v13 = vpop.f32.mrb[0].mxu0 }
  0xf2   : > { %v388_v14 = vadd.f32 %v387_v13, %v336_v12  ;;  %v1829_v15 = vpop.f32.mrb[1].mxu0 }
  0xf3   : > { %v390_v16 = vpop.f32.mrb[2].mxu0 }
  0xf4   : > { %v2210_v17 = vpack.c.bf16 %v388_v14, %v388_v14  ;;  %v391_v18 = vadd.f32 %v390_v16, %v336_v12  ;;  %v1830_v19 = vpop.f32.mrb[3].mxu0 }
  0xf6   : > { %397 = vrot.lane.b32.xlu0 %v2210_v17, %s2096_s23  ;;  %v2213_v20 = vpack.c.bf16 %v391_v18, %v391_v18 }
  0xfa   : > { %447 = vrot.lane.b32.xlu0 %v2213_v20, %s2096_s23 }
 0x168   : > { %v398_v21 = vpop.permute.xlu0 %397 }
 0x169   : > { %v404_v22 = vsel %vm399_vm3, %v398_v21, 0 }
 0x16a   : > { %1832 = vmatpush3.bf16.xpose.msra.mxu1 %v404_v22 }
 0x16b   : > { %1843 = vmatprep.subr.bf16.mxu1 %v2094_v3 }
 0x16c   : > { %v448_v23 = vpop.permute.xlu0 %447 }
 0x16d   : > { %v453_v24 = vsel %vm399_vm3, %v448_v23, 0 }
 0x16e   : > { %1838 = vmatpush3.bf16.xpose.msra.mxu0 %v453_v24 }
 0x16f   : > { %1849 = vmatprep.subr.bf16.mxu0 %v2094_v3 }
 0x171   : > { %1834 = vmatmul.mubr.msk.bf16.vlgmr.msra.gmra.mrb[0].mxu1 %vm399_vm3, %v2210_v17 }
 0x172   : > { %1845 = vmatprep.mubr.msk.bf16.mxu1 %vm2095_vm1, %v2094_v3 }
 0x175   : > { %1840 = vmatmul.mubr.msk.bf16.vlgmr.msra.gmra.mrb[4].mxu0 %vm399_vm3, %v2213_v20 }
 0x176   : > { %1851 = vmatprep.mubr.msk.bf16.mxu0 %vm2095_vm1, %v2094_v3 }
 0x244   : > { %v440_v25 = vpop.f32.mrb[0].mxu1 }
 0x245   : > { %v495_v26 = vmul.f32 0.35355338, %v440_v25  ;;  %v1835_v27 = vpop.f32.mrb[1].mxu1 }
 0x246   : > { %v443_v28 = vpop.f32.mrb[2].mxu1 }
 0x247   : > { %v1836_v29 = vpop.f32.mrb[3].mxu1  ;;  %v497_v30 = vsel %vm399_vm3, %v495_v26, -inf }
 0x248   : > { %498 = vmax.xlane.f32.xlu1 %v497_v30  ;;  %v489_v31 = vpop.f32.mrb[4].mxu0 }
 0x249   : > { %v496_v32 = vmul.f32 0.35355338, %v489_v31  ;;  %v1841_v33 = vpop.f32.mrb[5].mxu0 }
 0x24a   : > { %v492_v34 = vpop.f32.mrb[6].mxu0 }
 0x24b   : > { %v1842_v35 = vpop.f32.mrb[7].mxu0  ;;  %v500_v36 = vsel %vm399_vm3, %v496_v32, -inf }
 0x24c   : > { %501 = vmax.xlane.f32.xlu1 %v500_v36 }
 0x25d   : > { %521 = vrot.lane.b32.xlu1 %v2210_v17, %s2097_s25 }
 0x261   : > { %570 = vrot.lane.b32.xlu1 %v2213_v20, %s2097_s25 }
 0x265   : > { %620 = vrot.lane.b32.xlu1 %v2210_v17, %s2098_s26 }
 0x2d5   : > { %v499_v37 = vpop.xlane.xlu1 %498 }
 0x2d6   : > { %v503_v38 = vsub.f32 %v495_v26, %v499_v37 }
 0x2d8   : > { %v505_v39 = vmul.f32 1.442695, %v503_v38 }
 0x2d9   : > { %v502_v40 = vpop.xlane.xlu1 %501 }
 0x2da   : > { %2012 = vpow2.f32 %v505_v39  ;;  %v504_v41 = vsub.f32 %v496_v32, %v502_v40 }
 0x2dc   : > { %v507_v42 = vmul.f32 1.442695, %v504_v41 }
 0x2dd   : > { %v522_v43 = vpop.permute.xlu1 %521 }
 0x2de   : > { %2014 = vpow2.f32 %v507_v42  ;;  %v528_v44 = vsel %vm526_vm4, %v522_v43, 0 }
 0x2df   : > { %1844 = vmatpush3.bf16.msra.mxu1 %v528_v44 }
 0x2e0   : > { %1855 = vmatprep.subr.bf16.mxu1 %v2094_v3 }
 0x2e1   : > { %v571_v45 = vpop.permute.xlu1 %570 }
 0x2e2   : > { %v576_v46 = vsel %vm526_vm4, %v571_v45, 0 }
 0x2e3   : > { %1850 = vmatpush3.bf16.msra.mxu0 %v576_v46 }
 0x2e4   : > { %v2013_v47 = vpop.eup %2012  ;;  %1861 = vmatprep.subr.bf16.mxu0 %v2094_v3 }
 0x2e5   : > { %v509_v48 = vsel %vm399_vm3, %v2013_v47, 0.0  ;;  %v621_v51 = vpop.permute.xlu1 %620 }
 0x2e6   : > { %510 = vadd.xlane.f32.xlu0 %v509_v48  ;;  %v626_v58 = vsel %vm399_vm3, %v621_v51, 0 }
 0x2e8   : > { %v2015_v49 = vpop.eup %2014 }
 0x2e9   : > { %v512_v50 = vsel %vm399_vm3, %v2015_v49, 0.0 }
 0x2ea   : > { %513 = vadd.xlane.f32.xlu1 %v512_v50 }
 0x2fb   : > { %670 = vrot.lane.b32.xlu1 %v2213_v20, %s2098_s26 }
 0x2fc   : > { %618 = vrot.lane.b32.xlu0 %v2210_v17, %s2099_s27 }
 0x2ff   : > { %668 = vrot.lane.b32.xlu1 %v2213_v20, %s2099_s27 }
 0x373   : > { %v511_v52 = vpop.xlane.xlu0 %510 }
 0x374   : > { %2016 = vrcp.f32 %v511_v52 }
 0x377   : > { %v514_v53 = vpop.xlane.xlu1 %513  ;;  %v619_v63 = vpop.permute.xlu0 %618 }
 0x378   : > { %2018 = vrcp.f32 %v514_v53 }
 0x37b   : > { %v671_v60 = vpop.permute.xlu1 %670 }
 0x37c   : > { %v676_v62 = vsel %vm399_vm3, %v671_v60, 0 }
 0x37e   : > { %v2017_v54 = vpop.eup %2016 }
 0x37f   : > { %v517_v55 = vmul.f32 %v2017_v54, %v2013_v47  ;;  %v669_v0 = vpop.permute.xlu1 %668 }
 0x381   : > { %v519_v56 = vpack.c.bf16 %v517_v55, %v517_v55 }
 0x382   : > { %v2019_v57 = vpop.eup %2018 }
 0x383   : > { %v518_v59 = vmul.f32 %v2019_v57, %v2015_v49  ;;  %1846 = vmatmul.mubr.msk.bf16.vlgmr.msra.gmra.mrb[4].mxu1 %vm399_vm3, %v519_v56 }
 0x384   : > { %1856 = vmatpush3.bf16.xpose.msra.mxu1 %v626_v58  ;;  %1857 = vmatprep.mubr.msk.bf16.mxu1 %vm2095_vm1, %v2094_v3 }
 0x385   : > { %v520_v61 = vpack.c.bf16 %v518_v59, %v518_v59  ;;  %1867 = vmatprep.subr.bf16.mxu1 %v2094_v3 }
 0x387   : > { %1852 = vmatmul.mubr.msk.bf16.vlgmr.msra.gmra.mrb[8].mxu0 %vm399_vm3, %v520_v61 }
 0x388   : > { %1862 = vmatpush3.bf16.xpose.msra.mxu0 %v676_v62  ;;  %1863 = vmatprep.mubr.msk.bf16.mxu0 %vm2095_vm1, %v2094_v3 }
 0x389   : > { %1873 = vmatprep.subr.bf16.mxu0 %v2094_v3 }
 0x38b   : > { %1858 = vmatmul.mubr.msk.bf16.vlgmr.msra.gmra.mrb[8].mxu1 %vm399_vm3, %v619_v63 }
 0x38c   : > { %1869 = vmatprep.mubr.msk.bf16.mxu1 %vm2095_vm1, %v2094_v3 }
 0x38f   : > { %1864 = vmatmul.mubr.msk.bf16.vlgmr.msra.gmra.mrb[12].mxu0 %vm399_vm3, %v669_v0 }
 0x390   : > { %1875 = vmatprep.mubr.msk.bf16.mxu0 %vm2095_vm1, %v2094_v3 }
 0x456   : > { %v2258_v1 = vpop.f32.mrb[4].mxu1 }
 0x457   : > { %v1847_v2 = vpop.f32.mrb[5].mxu1 }
 0x458   : > { %v567_v4 = vpop.f32.mrb[6].mxu1 }
 0x459   : > { %v1848_v7 = vpop.f32.mrb[7].mxu1 }
 0x45a   : > { %v2260_v8 = vpop.f32.mrb[8].mxu0 }
 0x45b   : > { %v1853_v10 = vpop.f32.mrb[9].mxu0 }
 0x45c   : > { %v615_v12 = vpop.f32.mrb[10].mxu0 }
 0x45d   : > { %v1854_v13 = vpop.f32.mrb[11].mxu0 }
 0x45e   : > { %v662_v14 = vpop.f32.mrb[8].mxu1 }
 0x45f   : > { %v718_v15 = vmul.f32 0.35355338, %v662_v14  ;;  %v1859_v16 = vpop.f32.mrb[9].mxu1 }
 0x460   : > { %v665_v18 = vpop.f32.mrb[10].mxu1 }
 0x461   : > { %v1860_v19 = vpop.f32.mrb[11].mxu1  ;;  %v720_v21 = vsel %vm399_vm3, %v718_v15, -inf }
 0x462   : > { %721 = vmax.xlane.f32.xlu1 %v720_v21  ;;  %v712_v22 = vpop.f32.mrb[12].mxu0 }
 0x463   : > { %v719_v23 = vmul.f32 0.35355338, %v712_v22  ;;  %v1865_v24 = vpop.f32.mrb[13].mxu0 }
 0x464   : > { %v715_v25 = vpop.f32.mrb[14].mxu0 }
 0x465   : > { %v1866_v26 = vpop.f32.mrb[15].mxu0  ;;  %v723_v27 = vsel %vm399_vm3, %v719_v23, -inf }
 0x466   : > { %724 = vmax.xlane.f32.xlu0 %v723_v27 }
 0x473   : > { %744 = vrot.lane.b32.xlu1 %v2210_v17, %s2100_s28 }
 0x477   : > { %842 = vrot.lane.b32.xlu1 %v2210_v17, %s2101_s29 }
 0x47c   : > { %792 = vrot.lane.b32.xlu0 %v2213_v20, %s2100_s28 }
 0x480   : > { %840 = vrot.lane.b32.xlu0 %v2210_v17, %s2102_s30 }
 0x4ef   : > { %v722_v28 = vpop.xlane.xlu1 %721 }
 0x4f0   : > { %v726_v29 = vsub.f32 %v718_v15, %v722_v28 }
 0x4f2   : > { %v728_v30 = vmul.f32 1.442695, %v726_v29 }
 0x4f3   : > { %v745_v31 = vpop.permute.xlu1 %744  ;;  %v725_v32 = vpop.xlane.xlu0 %724 }
 0x4f4   : > { %2020 = vpow2.f32 %v728_v30  ;;  %v750_v33 = vsel %vm526_vm4, %v745_v31, 0  ;;  %v727_v34 = vsub.f32 %v719_v23, %v725_v32 }
 0x4f5   : > { %1868 = vmatpush3.bf16.msra.mxu1 %v750_v33 }
 0x4f6   : > { %v730_v35 = vmul.f32 1.442695, %v727_v34  ;;  %1879 = vmatprep.subr.bf16.mxu1 %v2094_v3 }
 0x4f7   : > { %v793_v36 = vpop.permute.xlu0 %792  ;;  %v843_v42 = vpop.permute.xlu1 %842 }
 0x4f8   : > { %2022 = vpow2.f32 %v730_v35  ;;  %v798_v37 = vsel %vm526_vm4, %v793_v36, 0  ;;  %v848_v49 = vsel %vm399_vm3, %v843_v42, 0 }
 0x4f9   : > { %1874 = vmatpush3.bf16.msra.mxu0 %v798_v37 }
 0x4fa   : > { %1885 = vmatprep.subr.bf16.mxu0 %v2094_v3 }
 0x4fb   : > { %v841_v54 = vpop.permute.xlu0 %840 }
 0x4fe   : > { %v2021_v38 = vpop.eup %2020 }
 0x4ff   : > { %v732_v39 = vsel %vm399_vm3, %v2021_v38, 0.0 }
 0x500   : > { %733 = vadd.xlane.f32.xlu1 %v732_v39 }
 0x502   : > { %v2023_v40 = vpop.eup %2022 }
 0x503   : > { %v735_v41 = vsel %vm399_vm3, %v2023_v40, 0.0 }
 0x504   : > { %736 = vadd.xlane.f32.xlu1 %v735_v41 }
 0x515   : > { %892 = vrot.lane.b32.xlu1 %v2213_v20, %s2101_s29 }
 0x519   : > { %890 = vrot.lane.b32.xlu1 %v2213_v20, %s2102_s30 }
 0x58d   : > { %v734_v43 = vpop.xlane.xlu1 %733 }
 0x58e   : > { %2024 = vrcp.f32 %v734_v43 }
 0x591   : > { %v737_v44 = vpop.xlane.xlu1 %736 }
 0x592   : > { %2026 = vrcp.f32 %v737_v44 }
 0x595   : > { %v893_v51 = vpop.permute.xlu1 %892 }
 0x596   : > { %v898_v53 = vsel %vm399_vm3, %v893_v51, 0 }
 0x598   : > { %v2025_v45 = vpop.eup %2024 }
 0x599   : > { %v740_v46 = vmul.f32 %v2025_v45, %v2021_v38  ;;  %v891_v55 = vpop.permute.xlu1 %890 }
 0x59b   : > { %v742_v47 = vpack.c.bf16 %v740_v46, %v740_v46 }
 0x59c   : > { %v2027_v48 = vpop.eup %2026 }
 0x59d   : > { %v741_v50 = vmul.f32 %v2027_v48, %v2023_v40  ;;  %1870 = vmatmul.mubr.msk.bf16.vlgmr.msra.gmra.mrb[12].mxu1 %vm399_vm3, %v742_v47 }
 0x59e   : > { %1880 = vmatpush3.bf16.xpose.msra.mxu1 %v848_v49  ;;  %1881 = vmatprep.mubr.msk.bf16.mxu1 %vm2095_vm1, %v2094_v3 }
 0x59f   : > { %v743_v52 = vpack.c.bf16 %v741_v50, %v741_v50  ;;  %1891 = vmatprep.subr.bf16.mxu1 %v2094_v3 }
 0x5a1   : > { %1876 = vmatmul.mubr.msk.bf16.vlgmr.msra.gmra.mrb[16].mxu0 %vm399_vm3, %v743_v52 }
 0x5a2   : > { %1886 = vmatpush3.bf16.xpose.msra.mxu0 %v898_v53  ;;  %1887 = vmatprep.mubr.msk.bf16.mxu0 %vm2095_vm1, %v2094_v3 }
 0x5a3   : > { %1897 = vmatprep.subr.bf16.mxu0 %v2094_v3 }
 0x5a5   : > { %1882 = vmatmul.mubr.msk.bf16.vlgmr.msra.gmra.mrb[16].mxu1 %vm399_vm3, %v841_v54 }
 0x5a6   : > { %1893 = vmatprep.mubr.msk.bf16.mxu1 %vm2095_vm1, %v2094_v3 }
 0x5a9   : > { %1888 = vmatmul.mubr.msk.bf16.vlgmr.msra.gmra.mrb[20].mxu0 %vm399_vm3, %v891_v55 }
 0x5aa   : > { %1899 = vmatprep.mubr.msk.bf16.mxu0 %vm2095_vm1, %v2094_v3 }
 0x670   : > { %v2292_v56 = vpop.f32.mrb[12].mxu1 }
 0x671   : > { %v1871_v57 = vpop.f32.mrb[13].mxu1 }
 0x672   : > { %v789_v58 = vpop.f32.mrb[14].mxu1 }
 0x673   : > { %v1872_v59 = vpop.f32.mrb[15].mxu1 }
 0x674   : > { %v2294_v60 = vpop.f32.mrb[16].mxu0 }
 0x675   : > { %v1987_v61 = vpack.i.bf16 %v2294_v60, %v2292_v56  ;;  %v1877_v62 = vpop.f32.mrb[17].mxu0 }
 0x676   : > { %v837_v63 = vpop.f32.mrb[18].mxu0 }
 0x677   : > { %v1878_v0 = vpop.f32.mrb[19].mxu0 }
 0x678   : > { %v884_v2 = vpop.f32.mrb[16].mxu1 }
 0x679   : > { %v940_v4 = vmul.f32 0.35355338, %v884_v2  ;;  %v1883_v7 = vpop.f32.mrb[17].mxu1 }
 0x67a   : > { %v887_v10 = vpop.f32.mrb[18].mxu1 }
 0x67b   : > { %v1884_v12 = vpop.f32.mrb[19].mxu1  ;;  %v942_v13 = vsel %vm399_vm3, %v940_v4, -inf }
 0x67c   : > { %943 = vmax.xlane.f32.xlu0 %v942_v13  ;;  %v934_v14 = vpop.f32.mrb[20].mxu0 }
 0x67d   : > { %v941_v15 = vmul.f32 0.35355338, %v934_v14  ;;  %v1889_v16 = vpop.f32.mrb[21].mxu0 }
 0x67e   : > { %v937_v18 = vpop.f32.mrb[22].mxu0 }
 0x67f   : > { %v1890_v19 = vpop.f32.mrb[23].mxu0  ;;  %v945_v21 = vsel %vm399_vm3, %v941_v15, -inf }
 0x680   : > { %946 = vmax.xlane.f32.xlu1 %v945_v21 }
 0x691   : > { %966 = vrot.lane.b32.xlu1 %v2210_v17, %s2103_s8 }
 0x695   : > { %1064 = vrot.lane.b32.xlu1 %v2210_v17, %s2104_s9 }
 0x699   : > { %1114 = vrot.lane.b32.xlu1 %v2213_v20, %s2104_s9 }
 0x69d   : > { %1112 = vrot.lane.b32.xlu1 %v2213_v20, %s2105_s11 }
 0x709   : > { %v944_v22 = vpop.xlane.xlu0 %943 }
 0x70a   : > { %v948_v23 = vsub.f32 %v940_v4, %v944_v22 }
 0x70c   : > { %v950_v24 = vmul.f32 1.442695, %v948_v23 }
 0x70d   : > { %v947_v25 = vpop.xlane.xlu1 %946 }
 0x70e   : > { %2028 = vpow2.f32 %v950_v24  ;;  %v949_v26 = vsub.f32 %v941_v15, %v947_v25 }
 0x710   : > { %v952_v27 = vmul.f32 1.442695, %v949_v26 }
 0x711   : > { %v967_v28 = vpop.permute.xlu1 %966 }
 0x712   : > { %2030 = vpow2.f32 %v952_v27  ;;  %v972_v29 = vsel %vm526_vm4, %v967_v28, 0 }
 0x713   : > { %1892 = vmatpush3.bf16.msra.mxu1 %v972_v29 }
 0x714   : > { %1903 = vmatprep.subr.bf16.mxu1 %v2094_v3 }
 0x715   : > { %v1065_v39 = vpop.permute.xlu1 %1064 }
 0x716   : > { %v1070_v43 = vsel %vm399_vm3, %v1065_v39, 0 }
 0x718   : > { %v2029_v30 = vpop.eup %2028 }
 0x719   : > { %v954_v31 = vsel %vm399_vm3, %v2029_v30, 0.0  ;;  %v1115_v45 = vpop.permute.xlu1 %1114 }
 0x71a   : > { %955 = vadd.xlane.f32.xlu0 %v954_v31  ;;  %v1120_v47 = vsel %vm399_vm3, %v1115_v45, 0 }
 0x71c   : > { %v2031_v32 = vpop.eup %2030 }
 0x71d   : > { %v957_v33 = vsel %vm399_vm3, %v2031_v32, 0.0  ;;  %v1113_v49 = vpop.permute.xlu1 %1112 }
 0x71e   : > { %958 = vadd.xlane.f32.xlu0 %v957_v33 }
 0x734   : > { %1014 = vrot.lane.b32.xlu0 %v2213_v20, %s2103_s8 }
 0x738   : > { %1062 = vrot.lane.b32.xlu0 %v2210_v17, %s2105_s11 }
 0x7a7   : > { %v956_v34 = vpop.xlane.xlu0 %955 }
 0x7a8   : > { %2032 = vrcp.f32 %v956_v34 }
 0x7ab   : > { %v959_v35 = vpop.xlane.xlu0 %958 }
 0x7ac   : > { %2034 = vrcp.f32 %v959_v35 }
 0x7af   : > { %v1015_v36 = vpop.permute.xlu0 %1014 }
 0x7b0   : > { %v1020_v37 = vsel %vm526_vm4, %v1015_v36, 0  ;;  %v2004_v36 = vld [vmem:[%s2165_s7] sm:$0xff]  }
 0x7b1   : > { %1898 = vmatpush3.bf16.msra.mxu0 %v1020_v37  ;;  %v2005_v37 = vld [vmem:[%s2165_s7 + $0x8] sm:$0xff]   ;;  %s2110_s7 = smov [#allocation2]  }
 0x7b2   : > { %v2033_v38 = vpop.eup %2032  ;;  %1909 = vmatprep.subr.bf16.mxu0 %v2094_v3 }
 0x7b3   : > { %v962_v40 = vmul.f32 %v2033_v38, %v2029_v30  ;;  %v1063_v48 = vpop.permute.xlu0 %1062 }
 0x7b5   : > { %v964_v41 = vpack.c.bf16 %v962_v40, %v962_v40 }
 0x7b6   : > { %v2035_v42 = vpop.eup %2034 }
 0x7b7   : > { %v963_v44 = vmul.f32 %v2035_v42, %v2031_v32  ;;  %1894 = vmatmul.mubr.msk.bf16.vlgmr.msra.gmra.mrb[20].mxu1 %vm399_vm3, %v964_v41 }
 0x7b8   : > { %1904 = vmatpush3.bf16.xpose.msra.mxu1 %v1070_v43  ;;  %1905 = vmatprep.mubr.msk.bf16.mxu1 %vm2095_vm1, %v2094_v3 }
 0x7b9   : > { %v965_v46 = vpack.c.bf16 %v963_v44, %v963_v44  ;;  %1915 = vmatprep.subr.bf16.mxu1 %v2094_v3 }
 0x7bb   : > { %1900 = vmatmul.mubr.msk.bf16.vlgmr.msra.gmra.mrb[24].mxu0 %vm399_vm3, %v965_v46 }
 0x7bc   : > { %1910 = vmatpush3.bf16.xpose.msra.mxu0 %v1120_v47  ;;  %1911 = vmatprep.mubr.msk.bf16.mxu0 %vm2095_vm1, %v2094_v3 }
 0x7bd   : > { %1921 = vmatprep.subr.bf16.mxu0 %v2094_v3 }
 0x7bf   : > { %1906 = vmatmul.mubr.msk.bf16.vlgmr.msra.gmra.mrb[24].mxu1 %vm399_vm3, %v1063_v48 }
 0x7c0   : > { %1917 = vmatprep.mubr.msk.bf16.mxu1 %vm2095_vm1, %v2094_v3 }
 0x7c3   : > { %1912 = vmatmul.mubr.msk.bf16.vlgmr.msra.gmra.mrb[28].mxu0 %vm399_vm3, %v1113_v49 }
 0x7c4   : > { %1923 = vmatprep.mubr.msk.bf16.mxu0 %vm2095_vm1, %v2094_v3 }
 0x88a   : > { %v1008_v50 = vpop.f32.mrb[20].mxu1 }
 0x88b   : > { %v1895_v51 = vpop.f32.mrb[21].mxu1 }
 0x88c   : > { %v1011_v52 = vpop.f32.mrb[22].mxu1 }
 0x88d   : > { %v1896_v53 = vpop.f32.mrb[23].mxu1 }
 0x88e   : > { %v1056_v54 = vpop.f32.mrb[24].mxu0 }
 0x88f   : > { %v1992_v55 = vpack.i.bf16 %v1056_v54, %v1008_v50  ;;  %v1901_v57 = vpop.f32.mrb[25].mxu0 }
 0x890   : > { %v1059_v58 = vpop.f32.mrb[26].mxu0 }
 0x891   : > { %v1902_v59 = vpop.f32.mrb[27].mxu0 }
 0x892   : > { %v1106_v62 = vpop.f32.mrb[24].mxu1 }
 0x893   : > { %v1162_v63 = vmul.f32 0.35355338, %v1106_v62  ;;  %v1907_v0 = vpop.f32.mrb[25].mxu1 }
 0x894   : > { %v1109_v2 = vpop.f32.mrb[26].mxu1 }
 0x895   : > { %v1908_v4 = vpop.f32.mrb[27].mxu1  ;;  %v1164_v7 = vsel %vm399_vm3, %v1162_v63, -inf }
 0x896   : > { %1165 = vmax.xlane.f32.xlu0 %v1164_v7  ;;  %v1156_v10 = vpop.f32.mrb[28].mxu0  ;;  %v1323_v4 = vsub.s32 1, %v2204_v9 }
 0x897   : > { %v1163_v12 = vmul.f32 0.35355338, %v1156_v10  ;;  %v1913_v13 = vpop.f32.mrb[29].mxu0 }
 0x898   : > { %v1159_v14 = vpop.f32.mrb[30].mxu0  ;;  %v1324_v7 = vrot.slane %v2207_v11, %v1323_v4 }
 0x899   : > { %v1914_v15 = vpop.f32.mrb[31].mxu0  ;;  %v1167_v16 = vsel %vm399_vm3, %v1163_v12, -inf }
 0x89a   : > { %1168 = vmax.xlane.f32.xlu1 %v1167_v16 }
 0x8ab   : > { %1188 = vrot.lane.b32.xlu1 %v2210_v17, %s2106_s12 }
 0x8af   : > { %1988 = vrot.lane.b32.xlu1 %v1987_v61, %s2107_s14 }
 0x8b3   : > { %1993 = vrot.lane.b32.xlu1 %v1992_v55, %s2108_s15 }
 0x923   : > { %v1166_v18 = vpop.xlane.xlu0 %1165 }
 0x924   : > { %v1170_v19 = vsub.f32 %v1162_v63, %v1166_v18 }
 0x926   : > { %v1172_v21 = vmul.f32 1.442695, %v1170_v19 }
 0x927   : > { %v1169_v22 = vpop.xlane.xlu1 %1168 }
 0x928   : > { %2036 = vpow2.f32 %v1172_v21  ;;  %v1171_v23 = vsub.f32 %v1163_v12, %v1169_v22 }
 0x92a   : > { %v1174_v24 = vmul.f32 1.442695, %v1171_v23 }
 0x92b   : > { %v1189_v25 = vpop.permute.xlu1 %1188 }
 0x92c   : > { %2038 = vpow2.f32 %v1174_v24  ;;  %v1194_v26 = vsel %vm526_vm4, %v1189_v25, 0 }
 0x92d   : > { %1916 = vmatpush3.bf16.msra.mxu1 %v1194_v26 }
 0x92e   : > { %1927 = vmatprep.subr.bf16.mxu1 %v2094_v3 }
 0x92f   : > { %v1989_v47 = vpop.permute.xlu1 %1988 }
 0x930   : > { %v1991_v49 = vunpack.i.h.bf16 %v1989_v47  ;;  %v1990_v50 = vunpack.i.l.bf16 %v1989_v47  ;;  %v2010_v47 = vld [vmem:[%s2175_s13 + $0x10] sm:$0xff]  }
 0x932   : > { %v2037_v17 = vpop.eup %2036  ;;  %v1309_v54 = vsel %vm399_vm3, %v2260_v8, %v1991_v49  ;;  %v1308_v55 = vsel %vm399_vm3, %v2258_v1, %v1990_v50  ;;  %v1429_v49 = vsub.s32 4, %v2204_v9 }
 0x933   : > { %v1176_v56 = vsel %vm399_vm3, %v2037_v17, 0.0  ;;  %v1994_v48 = vpop.permute.xlu1 %1993 }
 0x934   : > { %1177 = vadd.xlane.f32.xlu0 %v1176_v56  ;;  %v1996_v51 = vunpack.i.h.bf16 %v1994_v48  ;;  %v1995_v52 = vunpack.i.l.bf16 %v1994_v48  ;;  %v2011_v48 = vld [vmem:[%s2175_s13 + $0x18] sm:$0xff]   ;;  %v1430_v50 = vrot.slane %v2207_v11, %v1429_v49 }
 0x936   : > { %v2039_v60 = vpop.eup %2038  ;;  %v1311_v59 = vsel %vm1310_vm5, %v1308_v55, %v1995_v52  ;;  %v1312_v62 = vsel %vm1310_vm5, %v1309_v54, %v1996_v51 }
 0x937   : > { %v1179_v61 = vsel %vm399_vm3, %v2039_v60, 0.0 }
 0x938   : > { %1180 = vadd.xlane.f32.xlu0 %v1179_v61  ;;  %v2007_v61 = vld [vmem:[%s2170_s10 + $0x8] sm:$0xff]  }
 0x94e   : > { %1236 = vrot.lane.b32.xlu0 %v2213_v20, %s2106_s12 }
 0x9c1   : > { %v1178_v27 = vpop.xlane.xlu0 %1177 }
 0x9c2   : > { %2040 = vrcp.f32 %v1178_v27 }
 0x9c5   : > { %v1181_v28 = vpop.xlane.xlu0 %1180 }
 0x9c6   : > { %2042 = vrcp.f32 %v1181_v28 }
 0x9c9   : > { %v1237_v29 = vpop.permute.xlu0 %1236 }
 0x9ca   : > { %v1242_v30 = vsel %vm526_vm4, %v1237_v29, 0 }
 0x9cb   : > { %1922 = vmatpush3.bf16.msra.mxu0 %v1242_v30 }
 0x9cc   : > { %v2041_v31 = vpop.eup %2040  ;;  %1935 = vmatprep.subr.bf16.mxu0 %v2094_v3 }
 0x9cd   : > { %v1184_v32 = vmul.f32 %v2041_v31, %v2037_v17 }
 0x9cf   : > { %v1186_v33 = vpack.c.bf16 %v1184_v32, %v1184_v32 }
 0x9d0   : > { %v2043_v34 = vpop.eup %2042 }
 0x9d1   : > { %v1185_v35 = vmul.f32 %v2043_v34, %v2039_v60  ;;  %1918 = vmatmul.mubr.msk.bf16.vlgmr.msra.gmra.mrb[28].mxu1 %vm399_vm3, %v1186_v33  ;;  %v1412_v33 = vsub.s32 2, %v2204_v9 }
 0x9d2   : > { %1931 = vmatprep.mubr.msk.bf16.mxu1 %vm2095_vm1, %v2094_v3  ;;  %1928 = vmatpush3.bf16.msra.mxu1 %v2004_v36 }
 0x9d3   : > { %v1187_v20 = vpack.c.bf16 %v1185_v35, %v1185_v35  ;;  %1929 = vmatprep.subr.bf16.mxu1 %v2094_v3  ;;  %v1413_v34 = vrot.slane %v2207_v11, %v1412_v33  ;;  %v1418_v35 = vsub.s32 3, %v2204_v9 }
 0x9d5   : > { %1924 = vmatmul.mubr.msk.bf16.vlgmr.msra.gmra.mrb[32].mxu0 %vm399_vm3, %v1187_v20 }
 0x9d6   : > { %1939 = vmatprep.mubr.msk.bf16.mxu0 %vm2095_vm1, %v2094_v3  ;;  %1930 = vmatpush3.bf16.msra.mxu1 %v2005_v37 }
 0x9d7   : > { %1943 = vmatprep.subr.bf16.mxu1 %v2094_v3 }
 0xaa4   : > { %v1230_v38 = vpop.f32.mrb[28].mxu1 }
 0xaa5   : > { %v1919_v39 = vpop.f32.mrb[29].mxu1 }
 0xaa6   : > { %v1233_v40 = vpop.f32.mrb[30].mxu1 }
 0xaa7   : > { %v1920_v41 = vpop.f32.mrb[31].mxu1  ;;  %v1419_v40 = vrot.slane %v2207_v11, %v1418_v35 }
 0xaa8   : > { %v1278_v42 = vpop.f32.mrb[32].mxu0 }
 0xaa9   : > { %v1997_v43 = vpack.i.bf16 %v1278_v42, %v1230_v38  ;;  %v1925_v44 = vpop.f32.mrb[33].mxu0 }
 0xaaa   : > { %v1281_v45 = vpop.f32.mrb[34].mxu0 }
 0xaab   : > { %1998 = vrot.lane.b32.xlu0 %v1997_v43, %s2109_s16  ;;  %v1926_v46 = vpop.f32.mrb[35].mxu0  ;;  %v2008_v45 = vld [vmem:[%s2175_s13] sm:$0xff]  }
 0xaac   : > { %v2009_v46 = vld [vmem:[%s2175_s13 + $0x8] sm:$0xff]  }
 0xb1d   : > { %v1999_v53 = vpop.permute.xlu0 %1998 }
 0xb1e   : > { %v2001_v57 = vunpack.i.h.bf16 %v1999_v53  ;;  %v2000_v58 = vunpack.i.l.bf16 %v1999_v53 }
 0xb20   : > { %v1315_v63 = vsel %vm1313_vm6, %v1312_v62, %v2001_v57  ;;  %v1314_v0 = vsel %vm1313_vm6, %v1311_v59, %v2000_v58 }
 0xb21   : > { %v1316_v2 = vpack.c.bf16 %v1315_v63, %v1314_v0 }
 0xb23   : > { %1932 = vmatmul.mubr.msk.bf16.vlgmr.msra.gmra.mrb[32].mxu1 %vm349_vm2, %v1316_v2 }
 0xb24   : > { %1951 = vmatprep.mubr.msk.bf16.mxu1 %vm2095_vm1, %v2094_v3  ;;  %1944 = vmatpush3.bf16.msra.mxu1 %v2008_v45 }
 0xb25   : > { %1945 = vmatprep.subr.bf16.mxu1 %v2094_v3 }
 0xb28   : > { %1946 = vmatpush3.bf16.msra.mxu1 %v2009_v46 }
 0xb29   : > { %1947 = vmatprep.subr.bf16.mxu1 %v2094_v3 }
 0xb2c   : > { %1948 = vmatpush3.bf16.msra.mxu1 %v2010_v47 }
 0xb2d   : > { %1949 = vmatprep.subr.bf16.mxu1 %v2094_v3 }
 0xb30   : > { %1950 = vmatpush3.bf16.msra.mxu1 %v2011_v48 }
 0xbf6   : > { %v1374_v8 = vpop.f32.mrb[32].mxu1 }
 0xbf7   : > { %v1375_v10 = vadd.f32 %v1374_v8, %v1324_v7  ;;  %v1933_v12 = vpop.f32.mrb[33].mxu1 }
 0xbf8   : > { %v1377_v1 = vpop.f32.mrb[34].mxu1 }
 0xbf9   : > { %v1378_v13 = vadd.f32 %v1377_v1, %v1324_v7  ;;  %v1934_v14 = vpop.f32.mrb[35].mxu1  ;;  %v1381_v15 = vadd.f32 %v1375_v10, %v2191_v5 }
 0xbfb   : > { %v1383_v16 = vsel %vm349_vm2, %v1381_v15, 0.0  ;;  %v1382_v18 = vadd.f32 %v1378_v13, %v2193_v6  ;;  %v2006_v6 = vld [vmem:[%s2170_s10] sm:$0xff]   ;;  %s1635_s10 = sshll.u32 %s2110_s7, 4  ;;  %s1636_s10 = int_to_ptr.vmem [resolvable:$true] %s1635_s10 }
 0xbfc   : > { %1384 = vadd.xlane.f32.xlu1 %v1383_v16  ;;  %1936 = vmatpush3.bf16.msra.mxu0 %v2006_v6  ;;  %s2056_s13 = scalar_lea.vmem %s1636_s10, 256  ;;  %p2063_p9 = scmp.lt.s32.totalorder %s1636_s10, %s1636_s10 }
 0xbfd   : > { %v1386_v19 = vsel %vm349_vm2, %v1382_v18, 0.0  ;;  %1937 = vmatprep.subr.bf16.mxu0 %v2094_v3  ;;  %p2057_p6 = scmp.ne.s32.totalorder %s1636_s10, %s2056_s13  ;;  %p2064_p10 = scmp.lt.s32.totalorder %s2056_s13, %s2056_s13 }
 0xbfe   : > { %1387 = vadd.xlane.f32.xlu0 %v1386_v19 }
 0xbff   : > { %p2058_p7 = pnand %p2057_p6, %p1959_p5  ;;  %p2065_p11 = por %p2064_p10, %p2063_p9 }
 0xc00   : > { %1938 = vmatpush3.bf16.msra.mxu0 %v2007_v61 }
 0xc01   : > { %p2059_p8 = pneg %p2058_p7 }
 0xc03   : > { %p2066_p12 = pnand %p2065_p11, %p2059_p8 }
 0xc89   : > { %v1385_v21 = vpop.xlane.xlu1 %1384 }
 0xc8a   : > { %v1390_v22 = vmul.f32 0.03125, %v1385_v21  ;;  %v1516_v21 = vsub.s32 5, %v2204_v9 }
 0xc8b   : > { %v1388_v23 = vpop.xlane.xlu0 %1387 }
 0xc8c   : > { %v1392_v24 = vsub.f32 %v1381_v15, %v1390_v22  ;;  %v1391_v25 = vmul.f32 0.03125, %v1388_v23  ;;  %v1517_v22 = vrot.slane %v2207_v11, %v1516_v21 }
 0xc8e   : > { %v1393_v26 = vsub.f32 %v1382_v18, %v1391_v25  ;;  %v1394_v17 = vmul.f32 %v1392_v24, %v1392_v24 }
 0xc90   : > { %v1396_v56 = vsel %vm349_vm2, %v1394_v17, 0.0  ;;  %v1395_v5 = vmul.f32 %v1393_v26, %v1393_v26 }
 0xc91   : > { %1397 = vadd.xlane.f32.xlu0 %v1396_v56 }
 0xc92   : > { %v1399_v60 = vsel %vm349_vm2, %v1395_v5, 0.0 }
 0xc93   : > { %1400 = vadd.xlane.f32.xlu1 %v1399_v60 }
 0xd1e   : > { %v1398_v27 = vpop.xlane.xlu0 %1397 }
 0xd1f   : > { %v1402_v28 = vmul.f32 0.03125, %v1398_v27 }
 0xd20   : > { %v1401_v29 = vpop.xlane.xlu1 %1400 }
 0xd21   : > { %v1404_v30 = vadd.f32 1e-12, %v1402_v28  ;;  %v1403_v31 = vmul.f32 0.03125, %v1401_v29 }
 0xd23   : > { %2044 = vrsqrt.f32 %v1404_v30  ;;  %v1405_v32 = vadd.f32 1e-12, %v1403_v31 }
 0xd25   : > { %2046 = vrsqrt.f32 %v1405_v32 }
 0xd2d   : > { %v2045_v20 = vpop.eup %2044 }
 0xd2e   : > { %v1408_v36 = vmul.f32 %v2045_v20, %v1392_v24 }
 0xd2f   : > { %v2047_v37 = vpop.eup %2046 }
 0xd30   : > { %v1414_v38 = vmul.f32 %v1413_v34, %v1408_v36  ;;  %v1409_v39 = vmul.f32 %v2047_v37, %v1393_v26 }
 0xd32   : > { %v1415_v41 = vmul.f32 %v1413_v34, %v1409_v39  ;;  %v1420_v42 = vadd.f32 %v1419_v40, %v1414_v38 }
 0xd34   : > { %v1421_v43 = vadd.f32 %v1419_v40, %v1415_v41 }
 0xd36   : > { %v1422_v44 = vpack.c.bf16 %v1421_v43, %v1420_v42 }
 0xd38   : > { %1940 = vmatmul.mubr.msk.bf16.vlgmr.msra.gmra.mrb[36].mxu0 %vm349_vm2, %v1422_v44 }
 0xe0b   : > { %v1480_v51 = vpop.f32.mrb[36].mxu0 }
 0xe0c   : > { %v1481_v52 = vadd.f32 %v1480_v51, %v1430_v50  ;;  %v1941_v53 = vpop.f32.mrb[37].mxu0 }
 0xe0d   : > { %v1483_v54 = vpop.f32.mrb[38].mxu0 }
 0xe0e   : > { %v1489_v55 = vmul.f32 0.044715, %v1481_v52  ;;  %v1484_v57 = vadd.f32 %v1483_v54, %v1430_v50  ;;  %v1942_v58 = vpop.f32.mrb[39].mxu0  ;;  %v1487_v13 = vmul.f32 0.5, %v1481_v52 }
 0xe10   : > { %v1491_v59 = vmul.f32 %v1489_v55, %v1481_v52  ;;  %v1490_v62 = vmul.f32 0.044715, %v1484_v57  ;;  %v1488_v14 = vmul.f32 0.5, %v1484_v57 }
 0xe12   : > { %v1493_v63 = vmul.f32 %v1491_v59, %v1481_v52  ;;  %v1492_v0 = vmul.f32 %v1490_v62, %v1484_v57 }
 0xe14   : > { %v1495_v2 = vadd.f32 %v1493_v63, %v1481_v52  ;;  %v1494_v4 = vmul.f32 %v1492_v0, %v1484_v57 }
 0xe16   : > { %v1497_v7 = vmul.f32 0.7978846, %v1495_v2  ;;  %v1496_v3 = vadd.f32 %v1494_v4, %v1484_v57 }
 0xe18   : > { %2048 = vtanh.f32 %v1497_v7  ;;  %v1498_v8 = vmul.f32 0.7978846, %v1496_v3 }
 0xe1a   : > { %2050 = vtanh.f32 %v1498_v8 }
 0xe22   : > { %v2049_v10 = vpop.eup %2048 }
 0xe23   : > { %v1501_v12 = vadd.f32 1.0, %v2049_v10 }
 0xe24   : > { %v2051_v1 = vpop.eup %2050 }
 0xe25   : > { %v1502_v15 = vadd.f32 1.0, %v2051_v1  ;;  %v1503_v16 = vmul.f32 %v1501_v12, %v1487_v13 }
 0xe27   : > { %v1504_v18 = vmul.f32 %v1502_v15, %v1488_v14 }
 0xe29   : > { %v1505_v19 = vpack.c.bf16 %v1504_v18, %v1503_v16 }
 0xe2b   : > { %1952 = vmatmul.mubr.msk.bf16.vlgmr.msra.gmra.mrb[36].mxu1 %vm1542_vm7, %v1505_v19 }
 0xefe   : > { %v1580_v23 = vpop.f32.mrb[36].mxu1 }
 0xeff   : > { %v1581_v24 = vadd.f32 %v1580_v23, %v1517_v22  ;;  %v1953_v25 = vpop.f32.mrb[37].mxu1 }
 0xf00   : > { %v1583_v26 = vpop.f32.mrb[38].mxu1 }
 0xf01   : > { %v1584_v17 = vadd.f32 %v1583_v26, %v1517_v22  ;;  %v1954_v56 = vpop.f32.mrb[39].mxu1  ;;  %v1587_v5 = vadd.f32 %v1581_v24, %v1420_v42  ;;  %v1617_v42 = vsub.s32 6, %v2204_v9 }
 0xf03   : > { %v1589_v60 = vsel %vm349_vm2, %v1587_v5, 0.0  ;;  %v1588_v6 = vadd.f32 %v1584_v17, %v1421_v43  ;;  %v1623_v43 = vsub.s32 7, %v2204_v9  ;;  %v1618_v44 = vrot.slane %v2207_v11, %v1617_v42 }
 0xf04   : > { %1590 = vadd.xlane.f32.xlu0 %v1589_v60 }
 0xf05   : > { %v1592_v61 = vsel %vm349_vm2, %v1588_v6, 0.0  ;;  %v1624_v47 = vrot.slane %v2207_v11, %v1623_v43 }
 0xf06   : > { %1593 = vadd.xlane.f32.xlu1 %v1592_v61 }
 0xf91   : > { %v1591_v27 = vpop.xlane.xlu0 %1590 }
 0xf92   : > { %v1595_v28 = vmul.f32 0.03125, %v1591_v27 }
 0xf93   : > { %v1594_v29 = vpop.xlane.xlu1 %1593 }
 0xf94   : > { %v1597_v30 = vsub.f32 %v1587_v5, %v1595_v28  ;;  %v1596_v31 = vmul.f32 0.03125, %v1594_v29 }
 0xf96   : > { %v1598_v32 = vsub.f32 %v1588_v6, %v1596_v31  ;;  %v1599_v33 = vmul.f32 %v1597_v30, %v1597_v30 }
 0xf98   : > { %v1601_v34 = vsel %vm349_vm2, %v1599_v33, 0.0  ;;  %v1600_v35 = vmul.f32 %v1598_v32, %v1598_v32 }
 0xf99   : > { %1602 = vadd.xlane.f32.xlu0 %v1601_v34 }
 0xf9a   : > { %v1604_v20 = vsel %vm349_vm2, %v1600_v35, 0.0 }
 0xf9b   : > { %1605 = vadd.xlane.f32.xlu1 %v1604_v20 }
0x1026   : > { %v1603_v36 = vpop.xlane.xlu0 %1602 }
0x1027   : > { %v1607_v37 = vmul.f32 0.03125, %v1603_v36 }
0x1028   : > { %v1606_v38 = vpop.xlane.xlu1 %1605 }
0x1029   : > { %v1609_v39 = vadd.f32 1e-12, %v1607_v37  ;;  %v1608_v40 = vmul.f32 0.03125, %v1606_v38 }
0x102b   : > { %2052 = vrsqrt.f32 %v1609_v39  ;;  %v1610_v41 = vadd.f32 1e-12, %v1608_v40 }
0x102d   : > { %2054 = vrsqrt.f32 %v1610_v41 }
0x1035   : > { %v2053_v45 = vpop.eup %2052 }
0x1036   : > { %v1613_v46 = vmul.f32 %v2053_v45, %v1597_v30 }
0x1037   : > { %v2055_v48 = vpop.eup %2054 }
0x1038   : > { %v1619_v49 = vmul.f32 %v1618_v44, %v1613_v46  ;;  %v1614_v50 = vmul.f32 %v2055_v48, %v1598_v32 }
0x103a   : > { %v1620_v51 = vmul.f32 %v1618_v44, %v1614_v50  ;;  %v1625_v52 = vadd.f32 %v1624_v47, %v1619_v49 }
0x103c   : > { %v1626_v53 = vadd.f32 %v1624_v47, %v1620_v51  ;;  %1627 = vst.msk [vmem:[#allocation2] sm:$0xff] %vm349_vm2, %v1625_v52 }
0x103e   : > { %1628 = vst.msk [vmem:[#allocation2 + $0x8] sm:$0xff] %vm349_vm2, %v1626_v53 }
0x103f   : > { %2069 = shalt.err (!%p2066_p12)
}
0x1040   : > { %s2070_s19 = scalar_lea.hbm %s2429_s6, 256 }
0x1041   : > { %p2071_p13 = scmp.ne.s32.totalorder %s2429_s6, %s2070_s19  ;;  %p2076_p2 = scmp.lt.u32.totalorder %s2070_s19, %s2429_s6 }
0x1043   : > { %p2072_p0 = pnand %p2071_p13, %p1959_p5 }
0x1045   : > { %p2073_p1 = pneg %p2072_p0 }
0x1047   : > { %p2078_p3 = pnand %p2076_p2, %p2073_p1 }
0x1049   : > { %2081 = shalt.err (!%p2078_p3)
}
0x104a   : > { %s2111_s26 = smov 128  }
0x104b   : > { %1956 = dma.vmem_to_hbm [thread:$0]  (%p1959_p5), %s1636_s10, 256, %s2429_s6, [#allocation3], %s2111_s26, %s2111_s26, %s2107_s14  }
0x104c   : > { %2087 = dma.done.wait (%p1959_p5), [#allocation3], 256  }
0x104d   : > { %2089 = vsyncadd (%p1959_p5), [#allocation3], 4294967040 }
0x104e PF: > { %s17_s21 = sadd.s32 1, %s2092_s21  }
0x104f   : > { %p14_p4 = scmp.ge.s32.totalorder %s17_s21, 4  }
0x1051   :  { %16 = sbr.rel (!%p14_p4) target bundleno = 1 (0x1), region = 87 }
0x1058   :  { %1651 = vsyncpa [#allocation3], 1 }
0x1059   :  { %1653 = vsyncpa [#allocation3 + $0x1], 1 }

</bundles_post_ra>
